<compile_context>
chip_gen: v6e
topology: v6e:2x2x1
jax: 0.10.0
libtpu: 0.0.40
codegen_flags: <defaults>
</compile_context>

<pallas_src>
import jax
import jax.numpy as jnp
from jax.experimental import pallas as pl
from jax.experimental.pallas import tpu as pltpu


# ---------------------------------------------------------------------------
# Kernel 1: adaptive-avg-pool(8) + depthwise 2x2/stride-2 conv, per (B, C) tile.
# ---------------------------------------------------------------------------
def _pool_conv_kernel(x_ref, colsel_ref, w4_ref, y_ref):
    # x:      (Bb, Cb, H, W)  input block, original NCHW layout (no relayout)
    # colsel: (W, 8)          one-hot column-group selector / (hb*wb),
    #                         output columns ordered k = q*4 + j
    # w4:     (Cb, 4)         depthwise conv weight, columns ordered p*2 + q
    # y:      (Bb, Cb, 16)    conv output, last dim ordered s = i*4 + j
    Bb, Cb, H, W = x_ref.shape
    hb = H // 8

    # Column-group pooling on the MXU: one (Bb*Cb*H, W) x (W, 8) matmul.
    # (H % 8 == 0, so both reshapes below are layout-exact / free.)
    x2 = x_ref[...].astype(jnp.float32).reshape(Bb * Cb * H, W)
    t = jnp.dot(x2, colsel_ref[...], preferred_element_type=jnp.float32)
    t = t.reshape(Bb, Cb, H, 8)                       # (Bb, Cb, H, 8)

    w4 = w4_ref[...]                                  # (Cb, 4)
    w00 = w4[:, 0:1][None, :, :]                      # (1, Cb, 1)
    w01 = w4[:, 1:2][None, :, :]
    w10 = w4[:, 2:3][None, :, :]
    w11 = w4[:, 3:4][None, :, :]

    # Row-group pooling + 2x2 depthwise combination (tiny, fully unrolled).
    for i in range(4):
        r0 = jnp.sum(t[:, :, (2 * i) * hb:(2 * i + 1) * hb, :], axis=2)      # p = 0
        r1 = jnp.sum(t[:, :, (2 * i + 1) * hb:(2 * i + 2) * hb, :], axis=2)  # p = 1
        conv_i = (w00 * r0[:, :, 0:4] + w01 * r0[:, :, 4:8] +
                  w10 * r1[:, :, 0:4] + w11 * r1[:, :, 4:8])                 # (Bb, Cb, 4)
        y_ref[:, :, i * 4:(i + 1) * 4] = conv_i


# ---------------------------------------------------------------------------
# Kernel 2: BatchNorm2d (training-mode batch stats, single pass) + ReLU6.
# ---------------------------------------------------------------------------
def _bn_act_kernel(y_ref, gamma_ref, beta_ref, o_ref):
    # y: (B, C, 16) conv output;  gamma/beta: (C, 1);  o: (B, C, 16)
    y = y_ref[...]
    B, C, S = y.shape
    inv_n = 1.0 / float(B * S)
    s1 = jnp.sum(jnp.sum(y, axis=2, keepdims=True), axis=0, keepdims=True)       # (1, C, 1)
    s2 = jnp.sum(jnp.sum(y * y, axis=2, keepdims=True), axis=0, keepdims=True)
    mu = s1 * inv_n
    var = jnp.maximum(s2 * inv_n - mu * mu, 0.0)
    inv = jax.lax.rsqrt(var + 1e-5)
    g = gamma_ref[...][None, :, :]                                                # (1, C, 1)
    b = beta_ref[...][None, :, :]
    o_ref[...] = jnp.clip((y - mu) * inv * g + b, 0.0, 6.0)                       # ReLU6


# ---------------------------------------------------------------------------
# Kernel 3: fc_reduction (single K=16*C matmul) + ReLU6 + fc_extention + sigmoid.
# ---------------------------------------------------------------------------
def _fc_head_kernel(yf_ref, w1_ref, b1_ref, w2_ref, b2_ref, o_ref):
    # yf: (B, 16*C) flattened in PyTorch order (c*16 + s); w1: (16*C, Cr);
    # b1: (1, Cr); w2: (Cr, C); b2: (1, C); o: (B, C)
    h = jnp.dot(yf_ref[...], w1_ref[...], preferred_element_type=jnp.float32) + b1_ref[...]
    h = jnp.clip(h, 0.0, 6.0)                                                     # ReLU6
    o = jnp.dot(h, w2_ref[...], preferred_element_type=jnp.float32) + b2_ref[...]
    o_ref[...] = jax.nn.sigmoid(o)


# ---------------------------------------------------------------------------
# Tiling heuristic for the pooling kernel.
# ---------------------------------------------------------------------------
def _divisors(n):
    return [d for d in range(1, n + 1) if n % d == 0]


def _pick_tiles(B, C, H, W, target_bytes=2 * 1024 * 1024):
    """Channel tiles must be a multiple of 8 (or C itself) so the (Cblk, 16)
    output and (Cblk, 4) weight blocks satisfy the (8, 128) block-layout rule.
    Target ~2 MiB per input block (x2 for double buffering) -> fits the scoped
    VMEM defaults on v5e/v6e/v7x."""
    spatial = H * W * 4
    c_opts = [d for d in _divisors(C) if d % 8 == 0 or d == C]
    c_fit = [d for d in c_opts if d * spatial <= target_bytes]
    # Prefer >= 4 channel steps so the pipeline has something to double-buffer
    # (and megacore has work to split on v7x).
    c_multi = [d for d in c_fit if C // d >= 4]
    if c_multi:
        cblk = max(c_multi)
    elif c_fit:
        cblk = max(c_fit)
    else:
        cblk = min(c_opts)
        # TODO(synk): for extremely large H*W (single-channel block > target),
        # an extra grid axis over conv-row groups would be needed.
    b_fit = [d for d in _divisors(B) if d * cblk * spatial <= target_bytes]
    bblk = max(b_fit) if b_fit else 1
    return bblk, cblk


# ---------------------------------------------------------------------------
# Parameters / wrapper
# ---------------------------------------------------------------------------
def init_params(key, channels, reduction=16):
    cr = channels // reduction
    ks = jax.random.split(key, 6)
    return {
        "conv_w":   0.5 * jax.random.normal(ks[0], (channels, 2, 2), jnp.float32),
        "bn_gamma": 1.0 + 0.1 * jax.random.normal(ks[1], (channels,), jnp.float32),
        "bn_beta":  0.1 * jax.random.normal(ks[2], (channels,), jnp.float32),
        "w1":       0.1 * jax.random.normal(ks[3], (cr, channels * 16), jnp.float32),
        "b1":       jnp.full((cr,), 0.05, jnp.float32),
        "w2":       0.1 * jax.random.normal(ks[4], (channels, cr), jnp.float32),
        "b2":       0.05 * jax.random.normal(ks[5], (channels,), jnp.float32),
    }


def se_block_v2(x, params):
    """x: (B, C, H, W) float32, H % 8 == 0, W % 8 == 0.  Returns (B, C, 1, 1)."""
    B, C, H, W = x.shape
    assert H % 8 == 0 and W % 8 == 0
    hb, wb = H // 8, W // 8
    cr = params["w1"].shape[0]

    bblk, cblk = _pick_tiles(B, C, H, W)
    grid = (B // bblk, C // cblk)

    # Column-group selector: colsel[s, q*4 + j] = 1/(hb*wb) iff s // wb == 2j + q.
    sp = jnp.arange(W, dtype=jnp.int32) // wb
    k = (sp % 2) * 4 + (sp // 2)
    colsel = jax.nn.one_hot(k, 8, dtype=jnp.float32) * (1.0 / float(hb * wb))     # (W, 8)
    w4 = params["conv_w"].reshape(C, 4)                                           # cols p*2+q

    # --- Stage 1: pool + depthwise conv, tiled & pipelined over (batch, channel).
    yconv = pl.pallas_call(
        _pool_conv_kernel,
        out_shape=jax.ShapeDtypeStruct((B, C, 16), jnp.float32),
        grid=grid,
        in_specs=[
            pl.BlockSpec((bblk, cblk, H, W), lambda b, c: (b, c, 0, 0)),
            pl.BlockSpec((W, 8), lambda b, c: (0, 0)),
            pl.BlockSpec((cblk, 4), lambda b, c: (c, 0)),
        ],
        out_specs=pl.BlockSpec((bblk, cblk, 16), lambda b, c: (b, c, 0)),
        compiler_params=pltpu.CompilerParams(
            dimension_semantics=("parallel", "parallel")),
        cost_estimate=pl.CostEstimate(
            flops=2 * B * C * H * W * 8,
            transcendentals=0,
            bytes_accessed=B * C * H * W * 4 + B * C * 16 * 4),
    )(x, colsel, w4)

    # --- Stage 2: BatchNorm (training-mode batch stats) + ReLU6 on (B, C, 16).
    gamma = params["bn_gamma"].reshape(C, 1)
    beta = params["bn_beta"].reshape(C, 1)
    yact = pl.pallas_call(
        _bn_act_kernel,
        out_shape=jax.ShapeDtypeStruct((B, C, 16), jnp.float32),
        grid=(1,),
        in_specs=[
            pl.BlockSpec((B, C, 16), lambda i: (0, 0, 0)),
            pl.BlockSpec((C, 1), lambda i: (0, 0)),
            pl.BlockSpec((C, 1), lambda i: (0, 0)),
        ],
        out_specs=pl.BlockSpec((B, C, 16), lambda i: (0, 0, 0)),
        compiler_params=pltpu.CompilerParams(dimension_semantics=("arbitrary",)),
    )(yconv, gamma, beta)

    # --- Stage 3: FC head.  The flatten below is a free row-major reshape in HBM
    # and yields exactly PyTorch's flatten order (feature index = c*16 + s).
    yf = yact.reshape(B, C * 16)
    w1r = params["w1"].T                                                          # (16C, Cr)
    w2t = params["w2"].T                                                          # (Cr, C)
    out = pl.pallas_call(
        _fc_head_kernel,
        out_shape=jax.ShapeDtypeStruct((B, C), jnp.float32),
        grid=(1,),
        in_specs=[
            pl.BlockSpec((B, C * 16), lambda i: (0, 0)),
            pl.BlockSpec((C * 16, cr), lambda i: (0, 0)),
            pl.BlockSpec((1, cr), lambda i: (0, 0)),
            pl.BlockSpec((cr, C), lambda i: (0, 0)),
            pl.BlockSpec((1, C), lambda i: (0, 0)),
        ],
        out_specs=pl.BlockSpec((B, C), lambda i: (0, 0)),
        compiler_params=pltpu.CompilerParams(dimension_semantics=("arbitrary",)),
    )(yf, w1r, params["b1"].reshape(1, cr), w2t, params["b2"].reshape(1, C))

    return out.reshape(B, C, 1, 1)


# ---------------------------------------------------------------------------
# Pure-JAX reference mirroring the PyTorch forward (train-mode BatchNorm).
# ---------------------------------------------------------------------------
def se_block_v2_ref(x, params):
    B, C, H, W = x.shape
    hb, wb = H // 8, W // 8
    pooled = x.reshape(B, C, 8, hb, 8, wb).mean(axis=(3, 5))                      # (B,C,8,8)
    conv = jnp.einsum("bcipjq,cpq->bcij",
                      pooled.reshape(B, C, 4, 2, 4, 2), params["conv_w"])          # (B,C,4,4)
    mu = conv.mean(axis=(0, 2, 3), keepdims=True)
    var = ((conv - mu) ** 2).mean(axis=(0, 2, 3), keepdims=True)
    y = (conv - mu) / jnp.sqrt(var + 1e-5)
    y = y * params["bn_gamma"].reshape(1, C, 1, 1) + params["bn_beta"].reshape(1, C, 1, 1)
    y = jnp.clip(y, 0.0, 6.0).reshape(B, -1)
    h = jnp.clip(y @ params["w1"].T + params["b1"], 0.0, 6.0)
    o = jax.nn.sigmoid(h @ params["w2"].T + params["b2"])
    return o.reshape(B, C, 1, 1)


if __name__ == "__main__":
    key = jax.random.PRNGKey(0)
    kx, kp = jax.random.split(key)
    B, C, H, W = 2, 32, 16, 16
    x = jax.random.normal(kx, (B, C, H, W), jnp.float32)
    params = init_params(kp, C, reduction=16)

    out = jax.block_until_ready(se_block_v2(x, params))
    ref = jax.block_until_ready(se_block_v2_ref(x, params))

    assert out.shape == (B, C, 1, 1)
    assert bool(jnp.all(jnp.isfinite(out)))
    assert jnp.allclose(out, ref, rtol=1e-4, atol=1e-4), \
        float(jnp.max(jnp.abs(out - ref)))
    # TODO(synk): BatchNorm running-stat updates are a training side effect with
    # no bearing on the forward output; not modeled.
    print("KERNEL_OK")
</pallas_src>

<mosaic_0001>
module attributes {stable_mosaic.version = 11 : i64} {
  func.func @_pool_conv_kernel(%arg0: i32, %arg1: i32, %arg2: memref<2x8x16x16xf32, #tpu.memory_space<vmem>>, %arg3: memref<16x8xf32, #tpu.memory_space<vmem>>, %arg4: memref<8x4xf32, #tpu.memory_space<vmem>>, %arg5: memref<2x8x16xf32, #tpu.memory_space<vmem>>) attributes {dimension_semantics = [#tpu.dimension_semantics<parallel>, #tpu.dimension_semantics<parallel>], iteration_bounds = array<i64: 1, 4>, scalar_prefetch = 0 : i64, scratch_operands = 0 : i64, tpu.core_type = #tpu.core_type<tc>, window_params = [{transform_indices = @transform_0, window_bounds = array<i64: 2, 8, 16, 16>}, {pipeline_mode = #tpu.pipeline_mode<synchronous>, transform_indices = @transform_1, window_bounds = array<i64: 16, 8>}, {transform_indices = @transform_2, window_bounds = array<i64: 8, 4>}, {transform_indices = @transform_3, window_bounds = array<i64: 2, 8, 16>}]} {
    %c0 = arith.constant 0 : index
    %c0_0 = arith.constant 0 : index
    %c0_1 = arith.constant 0 : index
    %c0_2 = arith.constant 0 : index
    %0 = vector.load %arg2[%c0, %c0_0, %c0_1, %c0_2] : memref<2x8x16x16xf32, #tpu.memory_space<vmem>>, vector<2x8x16x16xf32>
    %1 = vector.shape_cast %0 : vector<2x8x16x16xf32> to vector<256x16xf32>
    %c0_3 = arith.constant 0 : index
    %c0_4 = arith.constant 0 : index
    %2 = vector.load %arg3[%c0_3, %c0_4] : memref<16x8xf32, #tpu.memory_space<vmem>>, vector<16x8xf32>
    %cst = arith.constant dense<0.000000e+00> : vector<256x8xf32>
    %3 = tpu.matmul %1, %2, %cst {dimension_numbers = #tpu.dot_dimension_numbers<[1], [0], [0], [1], [0, 0, 1, 1], [], []>} : vector<256x16xf32>, vector<16x8xf32>, vector<256x8xf32> -> vector<256x8xf32>
    %4 = vector.shape_cast %3 : vector<256x8xf32> to vector<2x8x16x8xf32>
    %c0_5 = arith.constant 0 : index
    %c0_6 = arith.constant 0 : index
    %5 = vector.load %arg4[%c0_5, %c0_6] : memref<8x4xf32, #tpu.memory_space<vmem>>, vector<8x4xf32>
    %6 = vector.extract_strided_slice %5 {offsets = [0, 0], sizes = [8, 1], strides = [1, 1]} : vector<8x4xf32> to vector<8x1xf32>
    %7 = vector.shape_cast %6 : vector<8x1xf32> to vector<1x8x1xf32>
    %8 = vector.extract_strided_slice %5 {offsets = [0, 1], sizes = [8, 1], strides = [1, 1]} : vector<8x4xf32> to vector<8x1xf32>
    %9 = vector.shape_cast %8 : vector<8x1xf32> to vector<1x8x1xf32>
    %10 = vector.extract_strided_slice %5 {offsets = [0, 2], sizes = [8, 1], strides = [1, 1]} : vector<8x4xf32> to vector<8x1xf32>
    %11 = vector.shape_cast %10 : vector<8x1xf32> to vector<1x8x1xf32>
    %12 = vector.extract_strided_slice %5 {offsets = [0, 3], sizes = [8, 1], strides = [1, 1]} : vector<8x4xf32> to vector<8x1xf32>
    %13 = vector.shape_cast %12 : vector<8x1xf32> to vector<1x8x1xf32>
    %14 = vector.extract_strided_slice %4 {offsets = [0, 0, 0, 0], sizes = [2, 8, 2, 8], strides = [1, 1, 1, 1]} : vector<2x8x16x8xf32> to vector<2x8x2x8xf32>
    %cst_7 = arith.constant dense<0.000000e+00> : vector<2x8x8xf32>
    %15 = vector.multi_reduction <add>, %14, %cst_7 [2] : vector<2x8x2x8xf32> to vector<2x8x8xf32>
    %16 = vector.extract_strided_slice %4 {offsets = [0, 0, 2, 0], sizes = [2, 8, 2, 8], strides = [1, 1, 1, 1]} : vector<2x8x16x8xf32> to vector<2x8x2x8xf32>
    %cst_8 = arith.constant dense<0.000000e+00> : vector<2x8x8xf32>
    %17 = vector.multi_reduction <add>, %16, %cst_8 [2] : vector<2x8x2x8xf32> to vector<2x8x8xf32>
    %18 = vector.extract_strided_slice %15 {offsets = [0, 0, 0], sizes = [2, 8, 4], strides = [1, 1, 1]} : vector<2x8x8xf32> to vector<2x8x4xf32>
    %19 = vector.broadcast %7 : vector<1x8x1xf32> to vector<2x8x4xf32>
    %20 = arith.mulf %19, %18 : vector<2x8x4xf32>
    %21 = vector.extract_strided_slice %15 {offsets = [0, 0, 4], sizes = [2, 8, 4], strides = [1, 1, 1]} : vector<2x8x8xf32> to vector<2x8x4xf32>
    %22 = vector.broadcast %9 : vector<1x8x1xf32> to vector<2x8x4xf32>
    %23 = arith.mulf %22, %21 : vector<2x8x4xf32>
    %24 = arith.addf %20, %23 : vector<2x8x4xf32>
    %25 = vector.extract_strided_slice %17 {offsets = [0, 0, 0], sizes = [2, 8, 4], strides = [1, 1, 1]} : vector<2x8x8xf32> to vector<2x8x4xf32>
    %26 = vector.broadcast %11 : vector<1x8x1xf32> to vector<2x8x4xf32>
    %27 = arith.mulf %26, %25 : vector<2x8x4xf32>
    %28 = arith.addf %24, %27 : vector<2x8x4xf32>
    %29 = vector.extract_strided_slice %17 {offsets = [0, 0, 4], sizes = [2, 8, 4], strides = [1, 1, 1]} : vector<2x8x8xf32> to vector<2x8x4xf32>
    %30 = vector.broadcast %13 : vector<1x8x1xf32> to vector<2x8x4xf32>
    %31 = arith.mulf %30, %29 : vector<2x8x4xf32>
    %32 = arith.addf %28, %31 : vector<2x8x4xf32>
    %c0_9 = arith.constant 0 : index
    %c0_10 = arith.constant 0 : index
    %c0_11 = arith.constant 0 : index
    %33 = vector.load %arg5[%c0_9, %c0_10, %c0_11] : memref<2x8x16xf32, #tpu.memory_space<vmem>>, vector<2x8x4xf32>
    tpu.vector_store %arg5[%c0_9, %c0_10, %c0_11], %32 {strides = array<i32>} : memref<2x8x16xf32, #tpu.memory_space<vmem>>, vector<2x8x4xf32>,
    %34 = vector.extract_strided_slice %4 {offsets = [0, 0, 4, 0], sizes = [2, 8, 2, 8], strides = [1, 1, 1, 1]} : vector<2x8x16x8xf32> to vector<2x8x2x8xf32>
    %cst_12 = arith.constant dense<0.000000e+00> : vector<2x8x8xf32>
    %35 = vector.multi_reduction <add>, %34, %cst_12 [2] : vector<2x8x2x8xf32> to vector<2x8x8xf32>
    %36 = vector.extract_strided_slice %4 {offsets = [0, 0, 6, 0], sizes = [2, 8, 2, 8], strides = [1, 1, 1, 1]} : vector<2x8x16x8xf32> to vector<2x8x2x8xf32>
    %cst_13 = arith.constant dense<0.000000e+00> : vector<2x8x8xf32>
    %37 = vector.multi_reduction <add>, %36, %cst_13 [2] : vector<2x8x2x8xf32> to vector<2x8x8xf32>
    %38 = vector.extract_strided_slice %35 {offsets = [0, 0, 0], sizes = [2, 8, 4], strides = [1, 1, 1]} : vector<2x8x8xf32> to vector<2x8x4xf32>
    %39 = vector.broadcast %7 : vector<1x8x1xf32> to vector<2x8x4xf32>
    %40 = arith.mulf %39, %38 : vector<2x8x4xf32>
    %41 = vector.extract_strided_slice %35 {offsets = [0, 0, 4], sizes = [2, 8, 4], strides = [1, 1, 1]} : vector<2x8x8xf32> to vector<2x8x4xf32>
    %42 = vector.broadcast %9 : vector<1x8x1xf32> to vector<2x8x4xf32>
    %43 = arith.mulf %42, %41 : vector<2x8x4xf32>
    %44 = arith.addf %40, %43 : vector<2x8x4xf32>
    %45 = vector.extract_strided_slice %37 {offsets = [0, 0, 0], sizes = [2, 8, 4], strides = [1, 1, 1]} : vector<2x8x8xf32> to vector<2x8x4xf32>
    %46 = vector.broadcast %11 : vector<1x8x1xf32> to vector<2x8x4xf32>
    %47 = arith.mulf %46, %45 : vector<2x8x4xf32>
    %48 = arith.addf %44, %47 : vector<2x8x4xf32>
    %49 = vector.extract_strided_slice %37 {offsets = [0, 0, 4], sizes = [2, 8, 4], strides = [1, 1, 1]} : vector<2x8x8xf32> to vector<2x8x4xf32>
    %50 = vector.broadcast %13 : vector<1x8x1xf32> to vector<2x8x4xf32>
    %51 = arith.mulf %50, %49 : vector<2x8x4xf32>
    %52 = arith.addf %48, %51 : vector<2x8x4xf32>
    %c0_14 = arith.constant 0 : index
    %c0_15 = arith.constant 0 : index
    %c4 = arith.constant 4 : index
    %53 = vector.load %arg5[%c0_14, %c0_15, %c4] : memref<2x8x16xf32, #tpu.memory_space<vmem>>, vector<2x8x4xf32>
    tpu.vector_store %arg5[%c0_14, %c0_15, %c4], %52 {strides = array<i32>} : memref<2x8x16xf32, #tpu.memory_space<vmem>>, vector<2x8x4xf32>,
    %54 = vector.extract_strided_slice %4 {offsets = [0, 0, 8, 0], sizes = [2, 8, 2, 8], strides = [1, 1, 1, 1]} : vector<2x8x16x8xf32> to vector<2x8x2x8xf32>
    %cst_16 = arith.constant dense<0.000000e+00> : vector<2x8x8xf32>
    %55 = vector.multi_reduction <add>, %54, %cst_16 [2] : vector<2x8x2x8xf32> to vector<2x8x8xf32>
    %56 = vector.extract_strided_slice %4 {offsets = [0, 0, 10, 0], sizes = [2, 8, 2, 8], strides = [1, 1, 1, 1]} : vector<2x8x16x8xf32> to vector<2x8x2x8xf32>
    %cst_17 = arith.constant dense<0.000000e+00> : vector<2x8x8xf32>
    %57 = vector.multi_reduction <add>, %56, %cst_17 [2] : vector<2x8x2x8xf32> to vector<2x8x8xf32>
    %58 = vector.extract_strided_slice %55 {offsets = [0, 0, 0], sizes = [2, 8, 4], strides = [1, 1, 1]} : vector<2x8x8xf32> to vector<2x8x4xf32>
    %59 = vector.broadcast %7 : vector<1x8x1xf32> to vector<2x8x4xf32>
    %60 = arith.mulf %59, %58 : vector<2x8x4xf32>
    %61 = vector.extract_strided_slice %55 {offsets = [0, 0, 4], sizes = [2, 8, 4], strides = [1, 1, 1]} : vector<2x8x8xf32> to vector<2x8x4xf32>
    %62 = vector.broadcast %9 : vector<1x8x1xf32> to vector<2x8x4xf32>
    %63 = arith.mulf %62, %61 : vector<2x8x4xf32>
    %64 = arith.addf %60, %63 : vector<2x8x4xf32>
    %65 = vector.extract_strided_slice %57 {offsets = [0, 0, 0], sizes = [2, 8, 4], strides = [1, 1, 1]} : vector<2x8x8xf32> to vector<2x8x4xf32>
    %66 = vector.broadcast %11 : vector<1x8x1xf32> to vector<2x8x4xf32>
    %67 = arith.mulf %66, %65 : vector<2x8x4xf32>
    %68 = arith.addf %64, %67 : vector<2x8x4xf32>
    %69 = vector.extract_strided_slice %57 {offsets = [0, 0, 4], sizes = [2, 8, 4], strides = [1, 1, 1]} : vector<2x8x8xf32> to vector<2x8x4xf32>
    %70 = vector.broadcast %13 : vector<1x8x1xf32> to vector<2x8x4xf32>
    %71 = arith.mulf %70, %69 : vector<2x8x4xf32>
    %72 = arith.addf %68, %71 : vector<2x8x4xf32>
    %c0_18 = arith.constant 0 : index
    %c0_19 = arith.constant 0 : index
    %c8 = arith.constant 8 : index
    %73 = vector.load %arg5[%c0_18, %c0_19, %c8] : memref<2x8x16xf32, #tpu.memory_space<vmem>>, vector<2x8x4xf32>
    tpu.vector_store %arg5[%c0_18, %c0_19, %c8], %72 {strides = array<i32>} : memref<2x8x16xf32, #tpu.memory_space<vmem>>, vector<2x8x4xf32>,
    %74 = vector.extract_strided_slice %4 {offsets = [0, 0, 12, 0], sizes = [2, 8, 2, 8], strides = [1, 1, 1, 1]} : vector<2x8x16x8xf32> to vector<2x8x2x8xf32>
    %cst_20 = arith.constant dense<0.000000e+00> : vector<2x8x8xf32>
    %75 = vector.multi_reduction <add>, %74, %cst_20 [2] : vector<2x8x2x8xf32> to vector<2x8x8xf32>
    %76 = vector.extract_strided_slice %4 {offsets = [0, 0, 14, 0], sizes = [2, 8, 2, 8], strides = [1, 1, 1, 1]} : vector<2x8x16x8xf32> to vector<2x8x2x8xf32>
    %cst_21 = arith.constant dense<0.000000e+00> : vector<2x8x8xf32>
    %77 = vector.multi_reduction <add>, %76, %cst_21 [2] : vector<2x8x2x8xf32> to vector<2x8x8xf32>
    %78 = vector.extract_strided_slice %75 {offsets = [0, 0, 0], sizes = [2, 8, 4], strides = [1, 1, 1]} : vector<2x8x8xf32> to vector<2x8x4xf32>
    %79 = vector.broadcast %7 : vector<1x8x1xf32> to vector<2x8x4xf32>
    %80 = arith.mulf %79, %78 : vector<2x8x4xf32>
    %81 = vector.extract_strided_slice %75 {offsets = [0, 0, 4], sizes = [2, 8, 4], strides = [1, 1, 1]} : vector<2x8x8xf32> to vector<2x8x4xf32>
    %82 = vector.broadcast %9 : vector<1x8x1xf32> to vector<2x8x4xf32>
    %83 = arith.mulf %82, %81 : vector<2x8x4xf32>
    %84 = arith.addf %80, %83 : vector<2x8x4xf32>
    %85 = vector.extract_strided_slice %77 {offsets = [0, 0, 0], sizes = [2, 8, 4], strides = [1, 1, 1]} : vector<2x8x8xf32> to vector<2x8x4xf32>
    %86 = vector.broadcast %11 : vector<1x8x1xf32> to vector<2x8x4xf32>
    %87 = arith.mulf %86, %85 : vector<2x8x4xf32>
    %88 = arith.addf %84, %87 : vector<2x8x4xf32>
    %89 = vector.extract_strided_slice %77 {offsets = [0, 0, 4], sizes = [2, 8, 4], strides = [1, 1, 1]} : vector<2x8x8xf32> to vector<2x8x4xf32>
    %90 = vector.broadcast %13 : vector<1x8x1xf32> to vector<2x8x4xf32>
    %91 = arith.mulf %90, %89 : vector<2x8x4xf32>
    %92 = arith.addf %88, %91 : vector<2x8x4xf32>
    %c0_22 = arith.constant 0 : index
    %c0_23 = arith.constant 0 : index
    %c12 = arith.constant 12 : index
    %93 = vector.load %arg5[%c0_22, %c0_23, %c12] : memref<2x8x16xf32, #tpu.memory_space<vmem>>, vector<2x8x4xf32>
    tpu.vector_store %arg5[%c0_22, %c0_23, %c12], %92 {strides = array<i32>} : memref<2x8x16xf32, #tpu.memory_space<vmem>>, vector<2x8x4xf32>,
    return
  }
  func.func @transform_0(%arg0: i32, %arg1: i32) -> (i32, i32, i32, i32) {
    %c0_i32 = arith.constant 0 : i32
    %c0_i32_0 = arith.constant 0 : i32
    %c0_i32_1 = arith.constant 0 : i32
    return %arg0, %arg1, %c0_i32, %c0_i32_0 : i32, i32, i32, i32
  }
  func.func @transform_1(%arg0: i32, %arg1: i32) -> (i32, i32) {
    %c0_i32 = arith.constant 0 : i32
    %c0_i32_0 = arith.constant 0 : i32
    %c0_i32_1 = arith.constant 0 : i32
    return %c0_i32, %c0_i32_0 : i32, i32
  }
  func.func @transform_2(%arg0: i32, %arg1: i32) -> (i32, i32) {
    %c0_i32 = arith.constant 0 : i32
    %c0_i32_0 = arith.constant 0 : i32
    return %arg1, %c0_i32 : i32, i32
  }
  func.func @transform_3(%arg0: i32, %arg1: i32) -> (i32, i32, i32) {
    %c0_i32 = arith.constant 0 : i32
    %c0_i32_0 = arith.constant 0 : i32
    return %arg0, %arg1, %c0_i32 : i32, i32, i32
  }
}

</mosaic_0001>

<bundles_post_ra>
// kernel: tpu_custom_call.1
= control target key start
LH: loop header
LB: loop body
LE: loop exit
PB: predicated region body
PF: predicated region fallthrough
CT: control target
= control target key end

     0   :  { %s2656_s12 = smov 0   ;;  %s2658_s13 = smov 0   ;;  %s3720_s0 = inlined_call_operand.vmem [shape: f32[2,32,16,16], index: 0, kind: input, shape index: {}]   ;;  %s3721_s1 = inlined_call_operand.vmem [shape: f32[16,8], index: 1, kind: input, shape index: {}]   ;;  %s3722_s2 = inlined_call_operand.vmem [shape: f32[32,4], index: 2, kind: input, shape index: {}]   ;;  %s3723_s3 = inlined_call_operand.vmem [shape: f32[2,32,16], index: 3, kind: output, shape index: {}]  }
   0x1   :  { %s2660_s14 = smov 0   ;;  %s2662_s15 = smov 0  }
   0x2   :  { %s2664_s16 = smov 0  }
   0x3 LB: > { %s22_s17 = sadd.s32 1, %s2622_s15  ;;  %s2394_s18 = sadd.s32 4294967295, %s2626_s16   ;;  %s2626_s16 = sphi %s2664_s16, %s13_s16   ;;  %s2622_s15 = sphi %s2662_s15, %s3950_s15   ;;  %s2618_s14 = sphi %s2660_s14, %s3949_s14   ;;  %s2614_s13 = sphi %s2658_s13, %s3948_s13   ;;  %s2610_s12 = sphi %s2656_s12, %s3947_s12  }
   0x4   : > { %p23_p0 = scmp.ge.s32.totalorder %s22_s17, 4  ;;  %p41_p1 = scmp.ne.s32.totalorder %s2614_s13, %s2610_s12 }
   0x5   : > { %p42_p2 = scmp.eq.s32.totalorder %s2626_s16, 0  ;;  %p120_p4 = scmp.eq.s32.totalorder %s2394_s18, 3 }
   0x6   : > { %s3952_s17 = smov (%p23_p0, %s22_s17), 0  ;;  %s34_s20 = sadd.s32 1, %s2614_s13 }
   0x7   : > { %p43_p3 = por %p42_p2, %p41_p1  ;;  %s30_s19 = ssub.s32 %s2622_s15, %s3952_s17 }
   0x8   : > { %p32_p5 = scmp.eq.s32.totalorder %s30_s19, 0  ;;  %p2691_p6 = por %p120_p4, %p41_p1 }
   0x9   : > { %p2397_p7 = scmp.ge.s32.totalorder %s2626_s16, 4 }
   0xa   : > { %s2696_s22 = scalar_select %p32_p5, %s2614_s13, %s34_s20  }
   0xb   : > { %145 = sbr.rel (%p2397_p7) target bundleno = 36 (0x24), region = 20 }
  0x10   : > { %148 = sbr.rel (!%p43_p3) target bundleno = 36 (0x24), region = 24  ;;  %s150_s23 = sand.u32 (%p43_p3), 1, %s2614_s13  }
  0x11   : > { %s2443_s24 = sshll.u32 (%p43_p3), %s2622_s15, 7  ;;  %s2398_s25 = sshll.u32 (%p43_p3), %s150_s23, 8 }
  0x12   : > { %s2704_s28 = scalar_lea.vmem (%p43_p3), %s3720_s0, %s2443_s24  ;;  %s2709_s29 = scalar_lea.vmem (%p43_p3), [#allocation2], %s2398_s25 }
  0x13   : > { %v250_v0 = vld [vmem:[%s2704_s28] sm:$0xff] (%p43_p3)  ;;  %v252_v1 = vld [vmem:[%s2704_s28 + $0x8] sm:$0xff] (%p43_p3)  ;;  %v254_v2 = vld [vmem:[%s2704_s28 + $0x10] sm:$0xff] (%p43_p3) }
  0x14   : > { %251 = vst [vmem:[%s2709_s29] sm:$0xff] (%p43_p3), %v250_v0  ;;  %253 = vst [vmem:[%s2709_s29 + $0x8] sm:$0xff] (%p43_p3), %v252_v1  ;;  %v256_v3 = vld [vmem:[%s2704_s28 + $0x18] sm:$0xff] (%p43_p3)  ;;  %v258_v4 = vld [vmem:[%s2704_s28 + $0x20] sm:$0xff] (%p43_p3) }
  0x15   : > { %255 = vst [vmem:[%s2709_s29 + $0x10] sm:$0xff] %v254_v2  ;;  %v260_v5 = vld [vmem:[%s2704_s28 + $0x28] sm:$0xff]  ;;  %257 = vst [vmem:[%s2709_s29 + $0x18] sm:$0xff] %v256_v3  ;;  %v262_v6 = vld [vmem:[%s2704_s28 + $0x30] sm:$0xff] }
  0x16   : > { %259 = vst [vmem:[%s2709_s29 + $0x20] sm:$0xff] %v258_v4  ;;  %261 = vst [vmem:[%s2709_s29 + $0x28] sm:$0xff] %v260_v5  ;;  %v264_v7 = vld [vmem:[%s2704_s28 + $0x38] sm:$0xff]  ;;  %v266_v8 = vld [vmem:[%s2704_s28 + $0x40] sm:$0xff] }
  0x17   : > { %263 = vst [vmem:[%s2709_s29 + $0x30] sm:$0xff] %v262_v6  ;;  %265 = vst [vmem:[%s2709_s29 + $0x38] sm:$0xff] %v264_v7  ;;  %v268_v9 = vld [vmem:[%s2704_s28 + $0x48] sm:$0xff]  ;;  %v270_v10 = vld [vmem:[%s2704_s28 + $0x50] sm:$0xff] }
  0x18   : > { %267 = vst [vmem:[%s2709_s29 + $0x40] sm:$0xff] %v266_v8  ;;  %v272_v11 = vld [vmem:[%s2704_s28 + $0x58] sm:$0xff]  ;;  %269 = vst [vmem:[%s2709_s29 + $0x48] sm:$0xff] %v268_v9  ;;  %v274_v12 = vld [vmem:[%s2704_s28 + $0x60] sm:$0xff] }
  0x19   : > { %271 = vst [vmem:[%s2709_s29 + $0x50] sm:$0xff] %v270_v10  ;;  %273 = vst [vmem:[%s2709_s29 + $0x58] sm:$0xff] %v272_v11  ;;  %v276_v13 = vld [vmem:[%s2704_s28 + $0x68] sm:$0xff]  ;;  %v278_v14 = vld [vmem:[%s2704_s28 + $0x70] sm:$0xff] }
  0x1a   : > { %275 = vst [vmem:[%s2709_s29 + $0x60] sm:$0xff] %v274_v12  ;;  %277 = vst [vmem:[%s2709_s29 + $0x68] sm:$0xff] %v276_v13  ;;  %v280_v15 = vld [vmem:[%s2704_s28 + $0x78] sm:$0xff]  ;;  %v282_v16 = vld [vmem:[%s2704_s28 + $0x200] sm:$0xff] }
  0x1b   : > { %279 = vst [vmem:[%s2709_s29 + $0x70] sm:$0xff] %v278_v14  ;;  %v284_v17 = vld [vmem:[%s2704_s28 + $0x208] sm:$0xff]  ;;  %281 = vst [vmem:[%s2709_s29 + $0x78] sm:$0xff] %v280_v15  ;;  %v286_v18 = vld [vmem:[%s2704_s28 + $0x210] sm:$0xff] }
  0x1c   : > { %283 = vst [vmem:[%s2709_s29 + $0x80] sm:$0xff] %v282_v16  ;;  %285 = vst [vmem:[%s2709_s29 + $0x88] sm:$0xff] %v284_v17  ;;  %v288_v19 = vld [vmem:[%s2704_s28 + $0x218] sm:$0xff]  ;;  %v290_v20 = vld [vmem:[%s2704_s28 + $0x220] sm:$0xff] }
  0x1d   : > { %287 = vst [vmem:[%s2709_s29 + $0x90] sm:$0xff] %v286_v18  ;;  %289 = vst [vmem:[%s2709_s29 + $0x98] sm:$0xff] %v288_v19  ;;  %v292_v21 = vld [vmem:[%s2704_s28 + $0x228] sm:$0xff]  ;;  %v294_v22 = vld [vmem:[%s2704_s28 + $0x230] sm:$0xff] }
  0x1e   : > { %291 = vst [vmem:[%s2709_s29 + $0xa0] sm:$0xff] %v290_v20  ;;  %v296_v23 = vld [vmem:[%s2704_s28 + $0x238] sm:$0xff]  ;;  %293 = vst [vmem:[%s2709_s29 + $0xa8] sm:$0xff] %v292_v21  ;;  %v298_v24 = vld [vmem:[%s2704_s28 + $0x240] sm:$0xff] }
  0x1f   : > { %295 = vst [vmem:[%s2709_s29 + $0xb0] sm:$0xff] %v294_v22  ;;  %297 = vst [vmem:[%s2709_s29 + $0xb8] sm:$0xff] %v296_v23  ;;  %v300_v25 = vld [vmem:[%s2704_s28 + $0x248] sm:$0xff]  ;;  %v302_v26 = vld [vmem:[%s2704_s28 + $0x250] sm:$0xff] }
  0x20   : > { %299 = vst [vmem:[%s2709_s29 + $0xc0] sm:$0xff] %v298_v24  ;;  %301 = vst [vmem:[%s2709_s29 + $0xc8] sm:$0xff] %v300_v25  ;;  %v304_v27 = vld [vmem:[%s2704_s28 + $0x258] sm:$0xff]  ;;  %v306_v28 = vld [vmem:[%s2704_s28 + $0x260] sm:$0xff] }
  0x21   : > { %303 = vst [vmem:[%s2709_s29 + $0xd0] sm:$0xff] %v302_v26  ;;  %v308_v29 = vld [vmem:[%s2704_s28 + $0x268] sm:$0xff]  ;;  %305 = vst [vmem:[%s2709_s29 + $0xd8] sm:$0xff] %v304_v27  ;;  %v310_v30 = vld [vmem:[%s2704_s28 + $0x270] sm:$0xff] }
  0x22   : > { %307 = vst [vmem:[%s2709_s29 + $0xe0] sm:$0xff] %v306_v28  ;;  %309 = vst [vmem:[%s2709_s29 + $0xe8] sm:$0xff] %v308_v29  ;;  %v312_v31 = vld [vmem:[%s2704_s28 + $0x278] sm:$0xff] }
  0x23   : > { %311 = vst [vmem:[%s2709_s29 + $0xf0] sm:$0xff] %v310_v30  ;;  %313 = vst [vmem:[%s2709_s29 + $0xf8] sm:$0xff] %v312_v31 }
  0x24 PF: > { %p2402_p8 = scmp.ge.s32.totalorder %s2626_s16, 1  ;;  %p325_p9 = scmp.lt.s32.totalorder %s2626_s16, 5 }
  0x26   : > { %p326_p10 = pnand %p2402_p8, %p325_p9 }
  0x28   : > { %329 = sbr.rel (%p326_p10) target bundleno = 753 (0x2f1), region = 66 }
  0x2d   : > { %v398_v32 = vld [vmem:[%s3721_s1 + $0x8] sm:$0xff]  ;;  %v397_v33 = vld [vmem:[%s3721_s1] sm:$0xff]  ;;  %s332_s7 = sand.u32 1, %s2610_s12   ;;  %p360_p11 = scmp.lt.s32.totalorder %s2618_s14, 3  ;;  %vm399_vm0 = vcmask 130048   ;;  %v2628_v44 = vmov 0  }
  0x2e   : > { %2478 = vmatprep.subr.mxu0 %v398_v32  ;;  %2530 = vmatprep.subr.mxu1 %v398_v32  ;;  %s2403_s8 = sshll.u32 %s332_s7, 8  ;;  %v2629_v45 = vmov 2   ;;  %vm722_vm1 = vcmask 58368   ;;  %vm1016_vm2 = vcmask 1041409   ;;  %vm1018_vm3 = vcmask 1042434   ;;  %s2632_s23 = smov 124  }
  0x2f   : > { %2479 = vmatpush3.msra.mxu0 %v398_v32  ;;  %2532 = vmatpush3.msra.mxu1 %v398_v32  ;;  %s2784_s9 = scalar_lea.vmem [#allocation2], %s2403_s8  ;;  %vm1020_vm4 = vcmask 1043459   ;;  %vm1022_vm5 = vcmask 1044484   ;;  %vm1024_vm6 = vcmask 1045509   ;;  %vm1026_vm7 = vcmask 1046534   ;;  %s2633_s24 = smov 8  }
  0x30   : > { %2480 = vmatprep.subr.mxu0 %v397_v33  ;;  %2531 = vmatprep.subr.mxu1 %v397_v33  ;;  %v365_v34 = vld [vmem:[%s2784_s9] sm:$0xff]  ;;  %v366_v36 = vld [vmem:[%s2784_s9 + $0x8] sm:$0xff]  ;;  %s361_s10 = scalar_select %p360_p11, %s2618_s14, 3  ;;  %v367_v38 = vld [vmem:[%s2784_s9 + $0x10] sm:$0xff]  ;;  %vm1028_vm8 = vcmask 1047559   ;;  %vm1109_vm9 = vcmask 31744  }
  0x31   : > { %v381_v35 = vld [vmem:[%s2784_s9 + $0x80] sm:$0xff]  ;;  %2481 = vmatpush3.msra.mxu0 %v397_v33  ;;  %2533 = vmatpush3.msra.mxu1 %v397_v33  ;;  %v382_v37 = vld [vmem:[%s2784_s9 + $0x88] sm:$0xff]  ;;  %v383_v39 = vld [vmem:[%s2784_s9 + $0x90] sm:$0xff]  ;;  %s2634_s25 = smov 4   ;;  %s2635_s26 = smov 12   ;;  %vm1498_vm10 = vcmask 64544  }
  0x32   : > { %2482 = vmatprep.mubr.msk.f32.mxu0 %vm399_vm0, %v365_v34  ;;  %2506 = vmatprep.mubr.msk.f32.mxu1 %vm399_vm0, %v381_v35  ;;  %v368_v40 = vld [vmem:[%s2784_s9 + $0x18] sm:$0xff]  ;;  %s2405_s11 = sshll.u32 %s361_s10, 3  ;;  %v369_v42 = vld [vmem:[%s2784_s9 + $0x20] sm:$0xff]  ;;  %v370_v46 = vld [vmem:[%s2784_s9 + $0x28] sm:$0xff]  ;;  %s2404_s27 = sshll.u32 %s332_s7, 4  ;;  %vm1871_vm11 = vcmask 97344  }
  0x33   : > { %2483 = vmatmul.mubr.msk.f32.vlgmr.msra.gmra.mxu0 %vm399_vm0, %v366_v36  ;;  %2507 = vmatmul.mubr.msk.f32.vlgmr.msra.gmra.mxu1 %vm399_vm0, %v382_v37  ;;  %v384_v41 = vld [vmem:[%s2784_s9 + $0x98] sm:$0xff]  ;;  %v385_v43 = vld [vmem:[%s2784_s9 + $0xa0] sm:$0xff]  ;;  %s2808_s20 = scalar_lea.vmem %s3722_s2, %s2405_s11  ;;  %v386_v47 = vld [vmem:[%s2784_s9 + $0xa8] sm:$0xff]  ;;  %s357_s28 = scalar_lea.vmem [#allocation3], %s2404_s27  ;;  %vm2260_vm12 = vcmask 130144  }
  0x34   : > { %2485 = vmatprep.mubr.msk.f32.mxu0 %vm399_vm0, %v367_v38  ;;  %2509 = vmatprep.mubr.msk.f32.mxu1 %vm399_vm0, %v383_v39  ;;  %v371_v48 = vld [vmem:[%s2784_s9 + $0x30] sm:$0xff]  ;;  %v721_v50 = vld [vmem:[%s2808_s20] sm:$0xff]  ;;  %v372_v51 = vld [vmem:[%s2784_s9 + $0x38] sm:$0xff]  ;;  %s2439_s12 = sshll.u32 (%p2691_p6), %s2618_s14, 3 }
  0x35   : > { %2582 = vset.pattern.permute.xlu0 %v2628_v44  ;;  %2584 = vset.pattern.permute.xlu1 %v2629_v45  ;;  %v387_v49 = vld [vmem:[%s2784_s9 + $0xb0] sm:$0xff]  ;;  %v388_v52 = vld [vmem:[%s2784_s9 + $0xb8] sm:$0xff]  ;;  %v373_v53 = vld [vmem:[%s2784_s9 + $0x40] sm:$0xff]  ;;  %s2274_s4 = scalar_lea.vmem (%p2691_p6), %s3723_s3, %s2439_s12 }
  0x36   : > { %v389_v54 = vld [vmem:[%s2784_s9 + $0xc0] sm:$0xff]  ;;  %997 = vperm.xlu0 %2582, %v721_v50   ;;  %1056 = vperm.xlu1 %2584, %v721_v50   ;;  %v374_v55 = vld [vmem:[%s2784_s9 + $0x48] sm:$0xff]  ;;  %v375_v57 = vld [vmem:[%s2784_s9 + $0x50] sm:$0xff] }
  0x37   : > { %2486 = vmatmul.mubr.msk.f32.gmra.mxu0 %vm399_vm0, %v368_v40  ;;  %2510 = vmatmul.mubr.msk.f32.gmra.mxu1 %vm399_vm0, %v384_v41  ;;  %v390_v56 = vld [vmem:[%s2784_s9 + $0xc8] sm:$0xff]  ;;  %v391_v58 = vld [vmem:[%s2784_s9 + $0xd0] sm:$0xff]  ;;  %v376_v59 = vld [vmem:[%s2784_s9 + $0x58] sm:$0xff] }
  0x38   : > { %2488 = vmatprep.mubr.msk.f32.mxu0 %vm399_vm0, %v369_v42  ;;  %2512 = vmatprep.mubr.msk.f32.mxu1 %vm399_vm0, %v385_v43  ;;  %v392_v60 = vld [vmem:[%s2784_s9 + $0xd8] sm:$0xff]  ;;  %v377_v61 = vld [vmem:[%s2784_s9 + $0x60] sm:$0xff]  ;;  %v378_v63 = vld [vmem:[%s2784_s9 + $0x68] sm:$0xff] }
  0x39   : > { %v393_v62 = vld [vmem:[%s2784_s9 + $0xe0] sm:$0xff]  ;;  %v394_v0 = vld [vmem:[%s2784_s9 + $0xe8] sm:$0xff]  ;;  %v379_v1 = vld [vmem:[%s2784_s9 + $0x70] sm:$0xff] }
  0x3a   : > { %v395_v2 = vld [vmem:[%s2784_s9 + $0xf0] sm:$0xff]  ;;  %v380_v3 = vld [vmem:[%s2784_s9 + $0x78] sm:$0xff] }
  0x3b   : > { %2489 = vmatmul.mubr.msk.f32.gmra.mxu0 %vm399_vm0, %v370_v46  ;;  %2513 = vmatmul.mubr.msk.f32.gmra.mxu1 %vm399_vm0, %v386_v47  ;;  %v396_v4 = vld [vmem:[%s2784_s9 + $0xf8] sm:$0xff] }
  0x3c   : > { %2491 = vmatprep.mubr.msk.f32.mxu0 %vm399_vm0, %v371_v48  ;;  %2515 = vmatprep.mubr.msk.f32.mxu1 %vm399_vm0, %v387_v49 }
  0x3f   : > { %2492 = vmatmul.mubr.msk.f32.gmra.mxu0 %vm399_vm0, %v372_v51  ;;  %2516 = vmatmul.mubr.msk.f32.gmra.mxu1 %vm399_vm0, %v388_v52 }
  0x40   : > { %2494 = vmatprep.mubr.msk.f32.mxu0 %vm399_vm0, %v373_v53  ;;  %2518 = vmatprep.mubr.msk.f32.mxu1 %vm399_vm0, %v389_v54 }
  0x43   : > { %2495 = vmatmul.mubr.msk.f32.gmra.mxu0 %vm399_vm0, %v374_v55  ;;  %2519 = vmatmul.mubr.msk.f32.gmra.mxu1 %vm399_vm0, %v390_v56 }
  0x44   : > { %2497 = vmatprep.mubr.msk.f32.mxu0 %vm399_vm0, %v375_v57  ;;  %2521 = vmatprep.mubr.msk.f32.mxu1 %vm399_vm0, %v391_v58 }
  0x47   : > { %2498 = vmatmul.mubr.msk.f32.gmra.mxu0 %vm399_vm0, %v376_v59  ;;  %2522 = vmatmul.mubr.msk.f32.gmra.mxu1 %vm399_vm0, %v392_v60 }
  0x48   : > { %2500 = vmatprep.mubr.msk.f32.mxu0 %vm399_vm0, %v377_v61  ;;  %2524 = vmatprep.mubr.msk.f32.mxu1 %vm399_vm0, %v393_v62 }
  0x4b   : > { %2501 = vmatmul.mubr.msk.f32.gmra.mxu0 %vm399_vm0, %v378_v63  ;;  %2525 = vmatmul.mubr.msk.f32.gmra.mxu1 %vm399_vm0, %v394_v0 }
  0x4c   : > { %2503 = vmatprep.mubr.msk.f32.mxu0 %vm399_vm0, %v379_v1  ;;  %2527 = vmatprep.mubr.msk.f32.mxu1 %vm399_vm0, %v395_v2 }
  0x4f   : > { %2504 = vmatmul.mubr.msk.f32.gmra.mxu0 %vm399_vm0, %v380_v3  ;;  %2528 = vmatmul.mubr.msk.f32.gmra.mxu1 %vm399_vm0, %v396_v4 }
  0xf3   : > { %v2484_v5 = vpop.f32.mrf.mxu0  ;;  %v2508_v6 = vpop.f32.mrf.mxu1 }
  0xf4   : > { %v1501_v7 = vsel %vm722_vm1, %v2484_v5, 0.0  ;;  %v1629_v8 = vrot.slane %v2484_v5, 2  ;;  %v1874_v9 = vrot.slane %v2484_v5, 4  ;;  %v2018_v10 = vrot.slane %v2484_v5, 6 }
  0xf5   : > { %v1502_v11 = vrot.slane %v1501_v7, 4  ;;  %v1557_v12 = vsel %vm722_vm1, %v2508_v6, 0.0  ;;  %v1637_v13 = vrot.slane %v2508_v6, 2  ;;  %v1882_v14 = vrot.slane %v2508_v6, 4  ;;  %v562_v43 = vpop.f32.mrf.mxu0  ;;  %v642_v47 = vpop.f32.mrf.mxu1 }
  0xf6   : > { %v1661_v15 = vsel %vm722_vm1, %v1629_v8, 0.0  ;;  %v1906_v16 = vsel %vm722_vm1, %v1874_v9, 0.0  ;;  %v2050_v17 = vsel %vm722_vm1, %v2018_v10, 0.0  ;;  %v1558_v18 = vrot.slane %v1557_v12, 4 }
  0xf7   : > { %v1503_v19 = vadd.f32 %v1502_v11, %v1501_v7  ;;  %v1662_v20 = vrot.slane %v1661_v15, 4  ;;  %v1907_v21 = vrot.slane %v1906_v16, 4  ;;  %v2051_v22 = vrot.slane %v2050_v17, 4 }
  0xf8   : > { %v1559_v23 = vadd.f32 %v1558_v18, %v1557_v12  ;;  %v1717_v24 = vsel %vm722_vm1, %v1637_v13, 0.0  ;;  %v1962_v25 = vsel %vm722_vm1, %v1882_v14, 0.0  ;;  %v2026_v26 = vrot.slane %v2508_v6, 6 }
  0xf9   : > { %v1504_v27 = vrot.slane %v1503_v19, 2  ;;  %v1663_v28 = vadd.f32 %v1662_v20, %v1661_v15  ;;  %v1908_v29 = vadd.f32 %v1907_v21, %v1906_v16  ;;  %v2052_v30 = vadd.f32 %v2051_v22, %v2050_v17 }
  0xfa   : > { %v1560_v31 = vrot.slane %v1559_v23, 2  ;;  %v1718_v32 = vrot.slane %v1717_v24, 4  ;;  %v1963_v33 = vrot.slane %v1962_v25, 4  ;;  %v2106_v34 = vsel %vm722_vm1, %v2026_v26, 0.0 }
  0xfb   : > { %v1505_v35 = vadd.f32 %v1504_v27, %v1503_v19  ;;  %v1664_v36 = vrot.slane %v1663_v28, 2  ;;  %v2107_v37 = vrot.slane %v2106_v34, 4  ;;  %v1909_v38 = vrot.slane %v1908_v29, 2  ;;  %v2487_v27 = vpop.f32.mrf.mxu0 }
  0xfc   : > { %v2053_v39 = vrot.slane %v2052_v30, 2  ;;  %v1561_v40 = vadd.f32 %v1560_v31, %v1559_v23  ;;  %v1719_v41 = vadd.f32 %v1718_v32, %v1717_v24  ;;  %v1964_v42 = vadd.f32 %v1963_v33, %v1962_v25 }
  0xfd   : > { %v1506_v44 = vrot.slane %v1505_v35, 1  ;;  %v1665_v45 = vadd.f32 %v1664_v36, %v1663_v28  ;;  %v2108_v46 = vadd.f32 %v2107_v37, %v2106_v34  ;;  %v1910_v48 = vadd.f32 %v1909_v38, %v1908_v29 }
  0xfe   : > { %v2054_v49 = vadd.f32 %v2053_v39, %v2052_v30  ;;  %v723_v50 = vsel %vm722_vm1, %v562_v43, 0.0  ;;  %v1562_v51 = vrot.slane %v1561_v40, 1  ;;  %v1720_v52 = vrot.slane %v1719_v41, 2 }
  0xff   : > { %v1965_v53 = vrot.slane %v1964_v42, 2  ;;  %v724_v54 = vrot.slane %v723_v50, 4  ;;  %v851_v55 = vrot.slane %v562_v43, 2  ;;  %v1112_v56 = vrot.slane %v562_v43, 4 }
 0x100   : > { %v1256_v57 = vrot.slane %v562_v43, 6  ;;  %v779_v58 = vsel %vm722_vm1, %v642_v47, 0.0  ;;  %v2867_v59 = vadd.f32 %v1506_v44, %v1505_v35  ;;  %v1666_v60 = vrot.slane %v1665_v45, 1 }
 0x101   : > { %v2109_v61 = vrot.slane %v2108_v46, 2  ;;  %v725_v62 = vadd.f32 %v724_v54, %v723_v50  ;;  %v883_v63 = vsel %vm722_vm1, %v851_v55, 0.0  ;;  %v1144_v0 = vsel %vm722_vm1, %v1112_v56, 0.0 }
 0x102   : > { %v1288_v1 = vsel %vm722_vm1, %v1256_v57, 0.0  ;;  %v780_v2 = vrot.slane %v779_v58, 4  ;;  %v1721_v3 = vadd.f32 %v1720_v52, %v1719_v41  ;;  %v884_v5 = vrot.slane %v883_v63, 4  ;;  %v2511_v52 = vpop.f32.mrf.mxu1 }
 0x103   : > { %v726_v4 = vrot.slane %v725_v62, 2  ;;  %v1145_v6 = vrot.slane %v1144_v0, 4  ;;  %v1289_v7 = vrot.slane %v1288_v1, 4  ;;  %v859_v9 = vrot.slane %v642_v47, 2 }
 0x104   : > { %v781_v8 = vadd.f32 %v780_v2, %v779_v58  ;;  %v1120_v10 = vrot.slane %v642_v47, 4  ;;  %v1911_v11 = vrot.slane %v1910_v48, 1  ;;  %v1966_v12 = vadd.f32 %v1965_v53, %v1964_v42 }
 0x105   : > { %v2110_v13 = vadd.f32 %v2109_v61, %v2108_v46  ;;  %v1264_v14 = vrot.slane %v642_v47, 6  ;;  %v727_v15 = vadd.f32 %v726_v4, %v725_v62  ;;  %v885_v16 = vadd.f32 %v884_v5, %v883_v63 }
 0x106   : > { %v939_v17 = vsel %vm722_vm1, %v859_v9, 0.0  ;;  %v1200_v18 = vsel %vm722_vm1, %v1120_v10, 0.0  ;;  %v2055_v19 = vrot.slane %v2054_v49, 1  ;;  %v1722_v20 = vrot.slane %v1721_v3, 1 }
 0x107   : > { %v1146_v21 = vadd.f32 %v1145_v6, %v1144_v0  ;;  %v940_v22 = vrot.slane %v939_v17, 4  ;;  %v1290_v23 = vadd.f32 %v1289_v7, %v1288_v1  ;;  %v782_v24 = vrot.slane %v781_v8, 2 }
 0x108   : > { %v1201_v25 = vrot.slane %v1200_v18, 4  ;;  %v1344_v26 = vsel %vm722_vm1, %v1264_v14, 0.0  ;;  %v2875_v28 = vadd.f32 %v1666_v60, %v1665_v45  ;;  %v2877_v29 = vadd.f32 %v1562_v51, %v1561_v40 }
 0x109   : > { %v1967_v30 = vrot.slane %v1966_v12, 1  ;;  %v2111_v31 = vrot.slane %v2110_v13, 1  ;;  %v728_v32 = vrot.slane %v727_v15, 1  ;;  %v886_v33 = vrot.slane %v885_v16, 2 }
 0x10a   : > { %3760 = vst [vmem:[#allocation4_spill] sm:$0xff] %v2875_v28  ;;  %v941_v34 = vadd.f32 %v940_v22, %v939_v17  ;;  %v1345_v35 = vrot.slane %v1344_v26, 4  ;;  %v2879_v36 = vadd.f32 %v1911_v11, %v1910_v48  ;;  %v2881_v37 = vadd.f32 %v2055_v19, %v2054_v49 }
 0x10b   : > { %v1202_v38 = vadd.f32 %v1201_v25, %v1200_v18  ;;  %v1508_v39 = vsel %vm722_vm1, %v2487_v27, 0.0  ;;  %v2884_v41 = vadd.f32 %v1722_v20, %v1721_v3  ;;  %v1147_v42 = vrot.slane %v1146_v21, 2 }
 0x10c   : > { %3761 = vst [vmem:[#allocation5_spill] sm:$0xff] %v2881_v37  ;;  %v1291_v43 = vrot.slane %v1290_v23, 2  ;;  %v783_v44 = vadd.f32 %v782_v24, %v781_v8  ;;  %v2886_v40 = vadd.f32 %v1967_v30, %v1966_v12  ;;  %v2888_v45 = vadd.f32 %v2111_v31, %v2110_v13 }
 0x10d   : > { %3762 = vst [vmem:[#allocation6_spill] sm:$0xff] %v2884_v41  ;;  %v1346_v46 = vadd.f32 %v1345_v35, %v1344_v26  ;;  %v1509_v47 = vrot.slane %v1508_v39, 4  ;;  %v2890_v50 = vadd.f32 %v728_v32, %v727_v15  ;;  %v887_v48 = vadd.f32 %v886_v33, %v885_v16  ;;  %v572_v26 = vpop.f32.mrf.mxu0 }
 0x10e   : > { %3763 = vst [vmem:[#allocation7_spill] sm:$0xff] %v2888_v45  ;;  %v942_v51 = vrot.slane %v941_v34, 2  ;;  %v1630_v49 = vrot.slane %v2487_v27, 2  ;;  %v1203_v53 = vrot.slane %v1202_v38, 2  ;;  %v1875_v55 = vrot.slane %v2487_v27, 4 }
 0x10f   : > { %3764 = vst [vmem:[#allocation8_spill] sm:$0xff] %v2890_v50  ;;  %v1510_v54 = vadd.f32 %v1509_v47, %v1508_v39  ;;  %v2019_v56 = vrot.slane %v2487_v27, 6  ;;  %v1148_v57 = vadd.f32 %v1147_v42, %v1146_v21  ;;  %v1292_v58 = vadd.f32 %v1291_v43, %v1290_v23 }
 0x110   : > { %v784_v60 = vrot.slane %v783_v44, 1  ;;  %v1668_v61 = vsel %vm722_vm1, %v1630_v49, 0.0  ;;  %v1347_v62 = vrot.slane %v1346_v46, 2  ;;  %v1913_v0 = vsel %vm722_vm1, %v1875_v55, 0.0  ;;  %v652_v55 = vpop.f32.mrf.mxu1 }
 0x111   : > { %v1669_v63 = vrot.slane %v1668_v61, 4  ;;  %v1564_v1 = vsel %vm722_vm1, %v2511_v52, 0.0  ;;  %v888_v2 = vrot.slane %v887_v48, 1  ;;  %v943_v3 = vadd.f32 %v942_v51, %v941_v34 }
 0x112   : > { %v1914_v4 = vrot.slane %v1913_v0, 4  ;;  %v2057_v5 = vsel %vm722_vm1, %v2019_v56, 0.0  ;;  %v1204_v6 = vadd.f32 %v1203_v53, %v1202_v38  ;;  %v1511_v7 = vrot.slane %v1510_v54, 2 }
 0x113   : > { %v1670_v8 = vadd.f32 %v1669_v63, %v1668_v61  ;;  %v2058_v9 = vrot.slane %v2057_v5, 4  ;;  %v1149_v10 = vrot.slane %v1148_v57, 1  ;;  %v1565_v11 = vrot.slane %v1564_v1, 4 }
 0x114   : > { %v1638_v12 = vrot.slane %v2511_v52, 2  ;;  %v1883_v13 = vrot.slane %v2511_v52, 4  ;;  %v1293_v14 = vrot.slane %v1292_v58, 1  ;;  %v1348_v15 = vadd.f32 %v1347_v62, %v1346_v46 }
 0x115   : > { %v1671_v16 = vrot.slane %v1670_v8, 2  ;;  %v1915_v17 = vadd.f32 %v1914_v4, %v1913_v0  ;;  %v2059_v18 = vadd.f32 %v2058_v9, %v2057_v5  ;;  %v2027_v21 = vrot.slane %v2511_v52, 6 }
 0x116   : > { %v1724_v19 = vsel %vm722_vm1, %v1638_v12, 0.0  ;;  %v1969_v20 = vsel %vm722_vm1, %v1883_v13, 0.0  ;;  %v2898_v22 = vadd.f32 %v784_v60, %v783_v44  ;;  %v944_v23 = vrot.slane %v943_v3, 1 }
 0x117   : > { %v1205_v24 = vrot.slane %v1204_v6, 1  ;;  %v1512_v25 = vadd.f32 %v1511_v7, %v1510_v54  ;;  %v1566_v27 = vadd.f32 %v1565_v11, %v1564_v1  ;;  %v1725_v30 = vrot.slane %v1724_v19, 4 }
 0x118   : > { %3765 = vst [vmem:[#allocation9_spill] sm:$0xff] %v2898_v22  ;;  %v1970_v31 = vrot.slane %v1969_v20, 4  ;;  %v2113_v32 = vsel %vm722_vm1, %v2027_v21, 0.0  ;;  %v2901_v33 = vadd.f32 %v888_v2, %v887_v48  ;;  %v1349_v34 = vrot.slane %v1348_v15, 1 }
 0x119   : > { %v1916_v35 = vrot.slane %v1915_v17, 2  ;;  %v2114_v38 = vrot.slane %v2113_v32, 4  ;;  %v1672_v39 = vadd.f32 %v1671_v16, %v1670_v8  ;;  %v2060_v42 = vrot.slane %v2059_v18, 2 }
 0x11a   : > { %3766 = vst [vmem:[#allocation10_spill] sm:$0xff] %v2901_v33  ;;  %v1726_v43 = vadd.f32 %v1725_v30, %v1724_v19  ;;  %v730_v44 = vsel %vm722_vm1, %v572_v26, 0.0  ;;  %v2904_v46 = vadd.f32 %v1149_v10, %v1148_v57  ;;  %v2906_v47 = vadd.f32 %v1293_v14, %v1292_v58 }
 0x11b   : > { %v2908_v51 = vadd.f32 %v944_v23, %v943_v3  ;;  %v1971_v49 = vadd.f32 %v1970_v31, %v1969_v20  ;;  %v2910_v52 = vadd.f32 %v1205_v24, %v1204_v6  ;;  %v1513_v53 = vrot.slane %v1512_v25, 1 }
 0x11c   : > { %3767 = vst [vmem:[#allocation11_spill] sm:$0xff] %v2904_v46  ;;  %3768 = vst [vmem:[#allocation12_spill] sm:$0xff] %v2906_v47  ;;  %v1567_v48 = vrot.slane %v1566_v27, 2  ;;  %v731_v54 = vrot.slane %v730_v44, 4  ;;  %v2912_v56 = vadd.f32 %v1349_v34, %v1348_v15  ;;  %v1917_v60 = vadd.f32 %v1916_v35, %v1915_v17 }
 0x11d   : > { %3769 = vst [vmem:[#allocation13_spill] sm:$0xff] %v2908_v51  ;;  %3770 = vst [vmem:[#allocation14_spill] sm:$0xff] %v2910_v52  ;;  %v2115_v61 = vadd.f32 %v2114_v38, %v2113_v32  ;;  %v852_v62 = vrot.slane %v572_v26, 2  ;;  %v1673_v63 = vrot.slane %v1672_v39, 1  ;;  %v2061_v0 = vadd.f32 %v2060_v42, %v2059_v18 }
 0x11e   : > { %3771 = vst [vmem:[#allocation15_spill] sm:$0xff] %v2912_v56  ;;  %v1727_v57 = vrot.slane %v1726_v43, 2  ;;  %v1113_v1 = vrot.slane %v572_v26, 4  ;;  %v1972_v58 = vrot.slane %v1971_v49, 2  ;;  %v1257_v3 = vrot.slane %v572_v26, 6 }
 0x11f   : > { %v890_v2 = vsel %vm722_vm1, %v852_v62, 0.0  ;;  %v786_v4 = vsel %vm722_vm1, %v652_v55, 0.0  ;;  %v2916_v5 = vadd.f32 %v1513_v53, %v1512_v25  ;;  %v1568_v6 = vadd.f32 %v1567_v48, %v1566_v27 }
 0x120   : > { %v732_v7 = vadd.f32 %v731_v54, %v730_v44  ;;  %v891_v8 = vrot.slane %v890_v2, 4  ;;  %v2116_v9 = vrot.slane %v2115_v61, 2  ;;  %v1151_v10 = vsel %vm722_vm1, %v1113_v1, 0.0 }
 0x121   : > { %v1295_v11 = vsel %vm722_vm1, %v1257_v3, 0.0  ;;  %v787_v12 = vrot.slane %v786_v4, 4  ;;  %v2920_v13 = vadd.f32 %v1673_v63, %v1672_v39  ;;  %v1918_v14 = vrot.slane %v1917_v60, 1  ;;  %v2490_v39 = vpop.f32.mrf.mxu0 }
 0x122   : > { %v2062_v15 = vrot.slane %v2061_v0, 1  ;;  %v892_v16 = vadd.f32 %v891_v8, %v890_v2  ;;  %v1728_v17 = vadd.f32 %v1727_v57, %v1726_v43  ;;  %v1973_v18 = vadd.f32 %v1972_v58, %v1971_v49 }
 0x123   : > { %3772 = vst [vmem:[#allocation16_spill] sm:$0xff] %v2920_v13  ;;  %v1152_v19 = vrot.slane %v1151_v10, 4  ;;  %v1296_v20 = vrot.slane %v1295_v11, 4  ;;  %v733_v21 = vrot.slane %v732_v7, 2  ;;  %v788_v23 = vadd.f32 %v787_v12, %v786_v4 }
 0x124   : > { %v860_v24 = vrot.slane %v652_v55, 2  ;;  %v1121_v25 = vrot.slane %v652_v55, 4  ;;  %v1569_v26 = vrot.slane %v1568_v6, 1  ;;  %v2117_v27 = vadd.f32 %v2116_v9, %v2115_v61 }
 0x125   : > { %v893_v30 = vrot.slane %v892_v16, 2  ;;  %v1265_v31 = vrot.slane %v652_v55, 6  ;;  %v1153_v32 = vadd.f32 %v1152_v19, %v1151_v10  ;;  %v1297_v34 = vadd.f32 %v1296_v20, %v1295_v11 }
 0x126   : > { %v946_v35 = vsel %vm722_vm1, %v860_v24, 0.0  ;;  %v1207_v38 = vsel %vm722_vm1, %v1121_v25, 0.0  ;;  %v2924_v42 = vadd.f32 %v1918_v14, %v1917_v60  ;;  %v1729_v43 = vrot.slane %v1728_v17, 1  ;;  %v2514_v24 = vpop.f32.mrf.mxu1 }
 0x127   : > { %v1974_v44 = vrot.slane %v1973_v18, 1  ;;  %v947_v49 = vrot.slane %v946_v35, 4  ;;  %v734_v53 = vadd.f32 %v733_v21, %v732_v7  ;;  %v789_v48 = vrot.slane %v788_v23, 2 }
 0x128   : > { %v1208_v54 = vrot.slane %v1207_v38, 4  ;;  %v1351_v62 = vsel %vm722_vm1, %v1265_v31, 0.0  ;;  %v2927_v61 = vadd.f32 %v2062_v15, %v2061_v0  ;;  %v2118_v55 = vrot.slane %v2117_v27, 1  ;;  %v662_v33 = vpop.f32.mrf.mxu1 }
 0x129   : > { %v894_v63 = vadd.f32 %v893_v30, %v892_v16  ;;  %v1515_v57 = vsel %vm722_vm1, %v2490_v39, 0.0  ;;  %v1154_v1 = vrot.slane %v1153_v32, 2  ;;  %v1298_v58 = vrot.slane %v1297_v34, 2 }
 0x12a   : > { %3773 = vst [vmem:[#allocation17_spill] sm:$0xff] %v2927_v61  ;;  %v948_v2 = vadd.f32 %v947_v49, %v946_v35  ;;  %v1352_v3 = vrot.slane %v1351_v62, 4  ;;  %v2930_v60 = vadd.f32 %v1569_v26, %v1568_v6  ;;  %v2932_v4 = vadd.f32 %v1729_v43, %v1728_v17 }
 0x12b   : > { %v2934_v8 = vadd.f32 %v1974_v44, %v1973_v18  ;;  %v1209_v7 = vadd.f32 %v1208_v54, %v1207_v38  ;;  %v735_v9 = vrot.slane %v734_v53, 1  ;;  %v790_v10 = vadd.f32 %v789_v48, %v788_v23 }
 0x12c   : > { %3774 = vst [vmem:[#allocation18_spill] sm:$0xff] %v2932_v4  ;;  %v1516_v11 = vrot.slane %v1515_v57, 4  ;;  %v1631_v0 = vrot.slane %v2490_v39, 2  ;;  %v2936_v12 = vadd.f32 %v2118_v55, %v2117_v27  ;;  %v895_v14 = vrot.slane %v894_v63, 1 }
 0x12d   : > { %v1353_v15 = vadd.f32 %v1352_v3, %v1351_v62  ;;  %v1876_v16 = vrot.slane %v2490_v39, 4  ;;  %v1155_v19 = vadd.f32 %v1154_v1, %v1153_v32  ;;  %v1299_v20 = vadd.f32 %v1298_v58, %v1297_v34 }
 0x12e   : > { %3775 = vst [vmem:[#allocation19_spill] sm:$0xff] %v2936_v12  ;;  %v949_v21 = vrot.slane %v948_v2, 2  ;;  %v1675_v6 = vsel %vm722_vm1, %v1631_v0, 0.0  ;;  %v1210_v17 = vrot.slane %v1209_v7, 2  ;;  %v2020_v26 = vrot.slane %v2490_v39, 6 }
 0x12f   : > { %v1676_v25 = vrot.slane %v1675_v6, 4  ;;  %v1920_v18 = vsel %vm722_vm1, %v1876_v16, 0.0  ;;  %v2940_v30 = vadd.f32 %v735_v9, %v734_v53  ;;  %v791_v23 = vrot.slane %v790_v10, 1  ;;  %v582_v16 = vpop.f32.mrf.mxu0 }
 0x130   : > { %v1517_v31 = vadd.f32 %v1516_v11, %v1515_v57  ;;  %v1921_v27 = vrot.slane %v1920_v18, 4  ;;  %v1354_v35 = vrot.slane %v1353_v15, 2  ;;  %v2064_v43 = vsel %vm722_vm1, %v2020_v26, 0.0 }
 0x131   : > { %3776 = vst [vmem:[#allocation20_spill] sm:$0xff] %v2940_v30  ;;  %v1677_v38 = vadd.f32 %v1676_v25, %v1675_v6  ;;  %v1571_v32 = vsel %vm722_vm1, %v2514_v24, 0.0  ;;  %v2944_v34 = vadd.f32 %v895_v14, %v894_v63  ;;  %v1156_v44 = vrot.slane %v1155_v19, 1 }
 0x132   : > { %v1300_v49 = vrot.slane %v1299_v20, 1  ;;  %v1922_v48 = vadd.f32 %v1921_v27, %v1920_v18  ;;  %v950_v54 = vadd.f32 %v949_v21, %v948_v2  ;;  %v1211_v62 = vadd.f32 %v1210_v17, %v1209_v7 }
 0x133   : > { %3777 = vst [vmem:[#allocation21_spill] sm:$0xff] %v2944_v34  ;;  %v2065_v55 = vrot.slane %v2064_v43, 4  ;;  %v1639_v39 = vrot.slane %v2514_v24, 2  ;;  %v2946_v53 = vadd.f32 %v791_v23, %v790_v10  ;;  %v1518_v1 = vrot.slane %v1517_v31, 2 }
 0x134   : > { %v1572_v57 = vrot.slane %v1571_v32, 4  ;;  %v1884_v58 = vrot.slane %v2514_v24, 4  ;;  %v1355_v3 = vadd.f32 %v1354_v35, %v1353_v15  ;;  %v1678_v9 = vrot.slane %v1677_v38, 2 }
 0x135   : > { %3778 = vst [vmem:[#allocation22_spill] sm:$0xff] %v2946_v53  ;;  %v2066_v11 = vadd.f32 %v2065_v55, %v2064_v43  ;;  %v1731_v0 = vsel %vm722_vm1, %v1639_v39, 0.0  ;;  %v1923_v63 = vrot.slane %v1922_v48, 2  ;;  %v2028_v25 = vrot.slane %v2514_v24, 6 }
 0x136   : > { %v1732_v14 = vrot.slane %v1731_v0, 4  ;;  %v1976_v6 = vsel %vm722_vm1, %v1884_v58, 0.0  ;;  %v2950_v2 = vadd.f32 %v1156_v44, %v1155_v19  ;;  %v951_v7 = vrot.slane %v950_v54, 1 }
 0x137   : > { %v1212_v21 = vrot.slane %v1211_v62, 1  ;;  %v1977_v10 = vrot.slane %v1976_v6, 4  ;;  %v1519_v17 = vadd.f32 %v1518_v1, %v1517_v31  ;;  %v1573_v18 = vadd.f32 %v1572_v57, %v1571_v32 }
 0x138   : > { %3779 = vst [vmem:[#allocation23_spill] sm:$0xff] %v2950_v2  ;;  %v2120_v26 = vsel %vm722_vm1, %v2028_v25, 0.0  ;;  %v737_v15 = vsel %vm722_vm1, %v582_v16, 0.0  ;;  %v2954_v23 = vadd.f32 %v1300_v49, %v1299_v20  ;;  %v1356_v27 = vrot.slane %v1355_v3, 1 }
 0x139   : > { %v1679_v35 = vadd.f32 %v1678_v9, %v1677_v38  ;;  %v2067_v43 = vrot.slane %v2066_v11, 2  ;;  %v1924_v55 = vadd.f32 %v1923_v63, %v1922_v48  ;;  %v1733_v39 = vadd.f32 %v1732_v14, %v1731_v0 }
 0x13a   : > { %3780 = vst [vmem:[#allocation24_spill] sm:$0xff] %v2954_v23  ;;  %v1978_v58 = vadd.f32 %v1977_v10, %v1976_v6  ;;  %v2121_v24 = vrot.slane %v2120_v26, 4  ;;  %v2956_v19 = vadd.f32 %v951_v7, %v950_v54  ;;  %v2958_v44 = vadd.f32 %v1212_v21, %v1211_v62 }
 0x13b   : > { %v738_v34 = vrot.slane %v737_v15, 4  ;;  %v853_v31 = vrot.slane %v582_v16, 2  ;;  %v1520_v32 = vrot.slane %v1519_v17, 1  ;;  %v1574_v1 = vrot.slane %v1573_v18, 2 }
 0x13c   : > { %3781 = vst [vmem:[#allocation25_spill] sm:$0xff] %v2956_v19  ;;  %3782 = vst [vmem:[#allocation26_spill] sm:$0xff] %v2958_v44  ;;  %v2122_v57 = vadd.f32 %v2121_v24, %v2120_v26  ;;  %v1114_v25 = vrot.slane %v582_v16, 4  ;;  %v2960_v20 = vadd.f32 %v1356_v27, %v1355_v3  ;;  %v1680_v49 = vrot.slane %v1679_v35, 1 }
 0x13d   : > { %v2068_v38 = vadd.f32 %v2067_v43, %v2066_v11  ;;  %v897_v48 = vsel %vm722_vm1, %v853_v31, 0.0  ;;  %v1925_v9 = vrot.slane %v1924_v55, 1  ;;  %v1734_v0 = vrot.slane %v1733_v39, 2 }
 0x13e   : > { %3783 = vst [vmem:[#allocation27_spill] sm:$0xff] %v2960_v20  ;;  %v1979_v63 = vrot.slane %v1978_v58, 2  ;;  %v898_v54 = vrot.slane %v897_v48, 4  ;;  %v739_v14 = vadd.f32 %v738_v34, %v737_v15  ;;  %v1158_v62 = vsel %vm722_vm1, %v1114_v25, 0.0 }
 0x13f   : > { %v1258_v6 = vrot.slane %v582_v16, 6  ;;  %v793_v7 = vsel %vm722_vm1, %v662_v33, 0.0  ;;  %v2965_v21 = vadd.f32 %v1520_v32, %v1519_v17  ;;  %v1575_v10 = vadd.f32 %v1574_v1, %v1573_v18 }
 0x140   : > { %v2123_v26 = vrot.slane %v2122_v57, 2  ;;  %v899_v3 = vadd.f32 %v898_v54, %v897_v48  ;;  %v2069_v27 = vrot.slane %v2068_v38, 1  ;;  %v1159_v24 = vrot.slane %v1158_v62, 4  ;;  %v2493_v48 = vpop.f32.mrf.mxu0 }
 0x141   : > { %v1302_v11 = vsel %vm722_vm1, %v1258_v6, 0.0  ;;  %v794_v43 = vrot.slane %v793_v7, 4  ;;  %v2968_v31 = vadd.f32 %v1680_v49, %v1679_v35  ;;  %v2970_v19 = vadd.f32 %v1925_v9, %v1924_v55 }
 0x142   : > { %v1735_v34 = vadd.f32 %v1734_v0, %v1733_v39  ;;  %v1303_v15 = vrot.slane %v1302_v11, 4  ;;  %v1980_v25 = vadd.f32 %v1979_v63, %v1978_v58  ;;  %v740_v16 = vrot.slane %v739_v14, 2  ;;  %v592_v12 = vpop.f32.mrf.mxu0 }
 0x143   : > { %3784 = vst [vmem:[#allocation28_spill] sm:$0xff] %v2968_v31  ;;  %3785 = vst [vmem:[#allocation29_spill] sm:$0xff] %v2970_v19  ;;  %v861_v51 = vrot.slane %v662_v33, 2  ;;  %v1122_v30 = vrot.slane %v662_v33, 4  ;;  %v2124_v17 = vadd.f32 %v2123_v26, %v2122_v57  ;;  %v900_v32 = vrot.slane %v899_v3, 2 }
 0x144   : > { %v1160_v18 = vadd.f32 %v1159_v24, %v1158_v62  ;;  %v795_v1 = vadd.f32 %v794_v43, %v793_v7  ;;  %v2972_v54 = vadd.f32 %v2069_v27, %v2068_v38  ;;  %v1576_v50 = vrot.slane %v1575_v10, 1  ;;  %v2496_v47 = vpop.f32.mrf.mxu0 }
 0x145   : > { %v953_v6 = vsel %vm722_vm1, %v861_v51, 0.0  ;;  %v1214_v35 = vsel %vm722_vm1, %v1122_v30, 0.0  ;;  %v1736_v55 = vrot.slane %v1735_v34, 1  ;;  %v1304_v49 = vadd.f32 %v1303_v15, %v1302_v11 }
 0x146   : > { %3786 = vst [vmem:[#allocation30_spill] sm:$0xff] %v2972_v54  ;;  %v954_v39 = vrot.slane %v953_v6, 4  ;;  %v1215_v9 = vrot.slane %v1214_v35, 4  ;;  %v1981_v58 = vrot.slane %v1980_v25, 1  ;;  %v741_v0 = vadd.f32 %v740_v16, %v739_v14 }
 0x147   : > { %v1266_v63 = vrot.slane %v662_v33, 6  ;;  %v1522_v57 = vsel %vm722_vm1, %v2493_v48, 0.0  ;;  %v2125_v26 = vrot.slane %v2124_v17, 1  ;;  %v901_v62 = vadd.f32 %v900_v32, %v899_v3 }
 0x148   : > { %v1161_v7 = vrot.slane %v1160_v18, 2  ;;  %v796_v24 = vrot.slane %v795_v1, 2  ;;  %v2977_v38 = vadd.f32 %v1576_v50, %v1575_v10  ;;  %v955_v27 = vadd.f32 %v954_v39, %v953_v6  ;;  %v2517_v10 = vpop.f32.mrf.mxu1 }
 0x149   : > { %v1358_v51 = vsel %vm722_vm1, %v1266_v63, 0.0  ;;  %v1523_v43 = vrot.slane %v1522_v57, 4  ;;  %v2980_v30 = vadd.f32 %v1736_v55, %v1735_v34  ;;  %v1305_v11 = vrot.slane %v1304_v49, 2 }
 0x14a   : > { %v1216_v15 = vadd.f32 %v1215_v9, %v1214_v35  ;;  %v1359_v53 = vrot.slane %v1358_v51, 4  ;;  %v2982_v22 = vadd.f32 %v1981_v58, %v1980_v25  ;;  %v742_v33 = vrot.slane %v741_v0, 1 }
 0x14b   : > { %3787 = vst [vmem:[#allocation31_spill] sm:$0xff] %v2980_v30  ;;  %v1524_v14 = vadd.f32 %v1523_v43, %v1522_v57  ;;  %v1632_v16 = vrot.slane %v2493_v48, 2  ;;  %v2984_v54 = vadd.f32 %v2125_v26, %v2124_v17  ;;  %v902_v3 = vrot.slane %v901_v62, 1 }
 0x14c   : > { %v1162_v32 = vadd.f32 %v1161_v7, %v1160_v18  ;;  %v797_v50 = vadd.f32 %v796_v24, %v795_v1  ;;  %v956_v6 = vrot.slane %v955_v27, 2  ;;  %v1877_v63 = vrot.slane %v2493_v48, 4 }
 0x14d   : > { %3788 = vst [vmem:[#allocation32_spill] sm:$0xff] %v2984_v54  ;;  %v1682_v39 = vsel %vm722_vm1, %v1632_v16, 0.0  ;;  %v2021_v34 = vrot.slane %v2493_v48, 6  ;;  %v1306_v55 = vadd.f32 %v1305_v11, %v1304_v49  ;;  %v1217_v61 = vrot.slane %v1216_v15, 2 }
 0x14e   : > { %v1360_v35 = vadd.f32 %v1359_v53, %v1358_v51  ;;  %v1683_v9 = vrot.slane %v1682_v39, 4  ;;  %v1525_v25 = vrot.slane %v1524_v14, 2  ;;  %v1927_v58 = vsel %vm722_vm1, %v1877_v63, 0.0 }
 0x14f   : > { %v2071_v57 = vsel %vm722_vm1, %v2021_v34, 0.0  ;;  %v1578_v17 = vsel %vm722_vm1, %v2517_v10, 0.0  ;;  %v2990_v26 = vadd.f32 %v742_v33, %v741_v0  ;;  %v2992_v18 = vadd.f32 %v902_v3, %v901_v62 }
 0x150   : > { %v1163_v1 = vrot.slane %v1162_v32, 1  ;;  %v1684_v7 = vadd.f32 %v1683_v9, %v1682_v39  ;;  %v798_v24 = vrot.slane %v797_v50, 1  ;;  %v957_v43 = vadd.f32 %v956_v6, %v955_v27 }
 0x151   : > { %3789 = vst [vmem:[#allocation33_spill] sm:$0xff] %v2990_v26  ;;  %3790 = vst [vmem:[#allocation34_spill] sm:$0xff] %v2992_v18  ;;  %v1928_v48 = vrot.slane %v1927_v58, 4  ;;  %v2072_v49 = vrot.slane %v2071_v57, 4  ;;  %v1307_v11 = vrot.slane %v1306_v55, 1  ;;  %v1579_v53 = vrot.slane %v1578_v17, 4 }
 0x152   : > { %v1640_v51 = vrot.slane %v2517_v10, 2  ;;  %v1885_v16 = vrot.slane %v2517_v10, 4  ;;  %v1218_v37 = vadd.f32 %v1217_v61, %v1216_v15  ;;  %v1361_v63 = vrot.slane %v1360_v35, 2 }
 0x153   : > { %v1526_v54 = vadd.f32 %v1525_v25, %v1524_v14  ;;  %v1685_v34 = vrot.slane %v1684_v7, 2  ;;  %v2994_v45 = vadd.f32 %v1163_v1, %v1162_v32  ;;  %v1929_v0 = vadd.f32 %v1928_v48, %v1927_v58 }
 0x154   : > { %v1738_v62 = vsel %vm722_vm1, %v1640_v51, 0.0  ;;  %v1983_v33 = vsel %vm722_vm1, %v1885_v16, 0.0  ;;  %v2998_v3 = vadd.f32 %v798_v24, %v797_v50  ;;  %v958_v27 = vrot.slane %v957_v43, 1 }
 0x155   : > { %3791 = vst [vmem:[#allocation35_spill] sm:$0xff] %v2994_v45  ;;  %v2073_v6 = vadd.f32 %v2072_v49, %v2071_v57  ;;  %v1739_v39 = vrot.slane %v1738_v62, 4  ;;  %v1580_v9 = vadd.f32 %v1579_v53, %v1578_v17  ;;  %v1984_v18 = vrot.slane %v1983_v33, 4 }
 0x156   : > { %3792 = vst [vmem:[#allocation36_spill] sm:$0xff] %v2998_v3  ;;  %v2029_v26 = vrot.slane %v2517_v10, 6  ;;  %v744_v61 = vsel %vm722_vm1, %v592_v12, 0.0  ;;  %v1219_v15 = vrot.slane %v1218_v37, 1  ;;  %v1362_v14 = vadd.f32 %v1361_v63, %v1360_v35 }
 0x157   : > { %v1527_v25 = vrot.slane %v1526_v54, 1  ;;  %v1686_v32 = vadd.f32 %v1685_v34, %v1684_v7  ;;  %v1930_v1 = vrot.slane %v1929_v0, 2  ;;  %v1740_v58 = vadd.f32 %v1739_v39, %v1738_v62 }
 0x158   : > { %v2127_v48 = vsel %vm722_vm1, %v2029_v26, 0.0  ;;  %v745_v51 = vrot.slane %v744_v61, 4  ;;  %v3002_v16 = vadd.f32 %v1307_v11, %v1306_v55  ;;  %v3004_v50 = vadd.f32 %v958_v27, %v957_v43  ;;  %v672_v11 = vpop.f32.mrf.mxu1 }
 0x159   : > { %v2074_v57 = vrot.slane %v2073_v6, 2  ;;  %v1985_v24 = vadd.f32 %v1984_v18, %v1983_v33  ;;  %v1581_v17 = vrot.slane %v1580_v9, 2  ;;  %v2128_v49 = vrot.slane %v2127_v48, 4 }
 0x15a   : > { %3793 = vst [vmem:[#allocation37_spill] sm:$0xff] %v3002_v16  ;;  %3794 = vst [vmem:[#allocation38_spill] sm:$0xff] %v3004_v50  ;;  %v746_v10 = vadd.f32 %v745_v51, %v744_v61  ;;  %v854_v53 = vrot.slane %v592_v12, 2  ;;  %v3006_v3 = vadd.f32 %v1219_v15, %v1218_v37  ;;  %v1363_v35 = vrot.slane %v1362_v14, 1 }
 0x15b   : > { %v3008_v63 = vadd.f32 %v1527_v25, %v1526_v54  ;;  %v1687_v7 = vrot.slane %v1686_v32, 1  ;;  %v1931_v34 = vadd.f32 %v1930_v1, %v1929_v0  ;;  %v1741_v62 = vrot.slane %v1740_v58, 2 }
 0x15c   : > { %3795 = vst [vmem:[#allocation39_spill] sm:$0xff] %v3006_v3  ;;  %v2129_v26 = vadd.f32 %v2128_v49, %v2127_v48  ;;  %v904_v55 = vsel %vm722_vm1, %v854_v53, 0.0  ;;  %v1986_v43 = vrot.slane %v1985_v24, 2  ;;  %v1115_v39 = vrot.slane %v592_v12, 4 }
 0x15d   : > { %v905_v27 = vrot.slane %v904_v55, 4  ;;  %v1259_v18 = vrot.slane %v592_v12, 6  ;;  %v2075_v33 = vadd.f32 %v2074_v57, %v2073_v6  ;;  %v1582_v50 = vadd.f32 %v1581_v17, %v1580_v9 }
 0x15e   : > { %v2130_v61 = vrot.slane %v2129_v26, 2  ;;  %v747_v51 = vrot.slane %v746_v10, 2  ;;  %v1165_v15 = vsel %vm722_vm1, %v1115_v39, 0.0  ;;  %v800_v0 = vsel %vm722_vm1, %v672_v11, 0.0 }
 0x15f   : > { %v906_v37 = vadd.f32 %v905_v27, %v904_v55  ;;  %v1309_v54 = vsel %vm722_vm1, %v1259_v18, 0.0  ;;  %v3014_v25 = vadd.f32 %v1363_v35, %v1362_v14  ;;  %v1932_v1 = vrot.slane %v1931_v34, 1 }
 0x160   : > { %v1742_v48 = vadd.f32 %v1741_v62, %v1740_v58  ;;  %v1166_v49 = vrot.slane %v1165_v15, 4  ;;  %v1987_v53 = vadd.f32 %v1986_v43, %v1985_v24  ;;  %v1310_v23 = vrot.slane %v1309_v54, 4 }
 0x161   : > { %3796 = vst [vmem:[#allocation40_spill] sm:$0xff] %v3014_v25  ;;  %v907_v16 = vrot.slane %v906_v37, 2  ;;  %v862_v12 = vrot.slane %v672_v11, 2  ;;  %v3016_v6 = vadd.f32 %v1687_v7, %v1686_v32  ;;  %v2076_v9 = vrot.slane %v2075_v33, 1 }
 0x162   : > { %v801_v57 = vrot.slane %v800_v0, 4  ;;  %v1123_v17 = vrot.slane %v672_v11, 4  ;;  %v1583_v55 = vrot.slane %v1582_v50, 1  ;;  %v2131_v27 = vadd.f32 %v2130_v61, %v2129_v26 }
 0x163   : > { %3797 = vst [vmem:[#allocation41_spill] sm:$0xff] %v3016_v6  ;;  %v748_v39 = vadd.f32 %v747_v51, %v746_v10  ;;  %v960_v18 = vsel %vm722_vm1, %v862_v12, 0.0  ;;  %v3019_v14 = vadd.f32 %v1932_v1, %v1931_v34  ;;  %v908_v35 = vadd.f32 %v907_v16, %v906_v37 }
 0x164   : > { %v1167_v58 = vadd.f32 %v1166_v49, %v1165_v15  ;;  %v1221_v24 = vsel %vm722_vm1, %v1123_v17, 0.0  ;;  %v1743_v62 = vrot.slane %v1742_v48, 1  ;;  %v1988_v43 = vrot.slane %v1987_v53, 1 }
 0x165   : > { %3798 = vst [vmem:[#allocation42_spill] sm:$0xff] %v3019_v14  ;;  %v1311_v25 = vadd.f32 %v1310_v23, %v1309_v54  ;;  %v961_v32 = vrot.slane %v960_v18, 4  ;;  %v802_v7 = vadd.f32 %v801_v57, %v800_v0  ;;  %v1222_v20 = vrot.slane %v1221_v24, 4 }
 0x166   : > { %v1267_v56 = vrot.slane %v672_v11, 6  ;;  %v1529_v45 = vsel %vm722_vm1, %v2496_v47, 0.0  ;;  %v3023_v26 = vadd.f32 %v2076_v9, %v2075_v33  ;;  %v3025_v10 = vadd.f32 %v1583_v55, %v1582_v50  ;;  %v2520_v55 = vpop.f32.mrf.mxu1 }
 0x167   : > { %v2132_v61 = vrot.slane %v2131_v27, 1  ;;  %v749_v34 = vrot.slane %v748_v39, 1  ;;  %v909_v51 = vrot.slane %v908_v35, 1  ;;  %v1168_v16 = vrot.slane %v1167_v58, 2 }
 0x168   : > { %3799 = vst [vmem:[#allocation43_spill] sm:$0xff] %v3023_v26  ;;  %v1365_v37 = vsel %vm722_vm1, %v1267_v56, 0.0  ;;  %v1530_v15 = vrot.slane %v1529_v45, 4  ;;  %v3028_v1 = vadd.f32 %v1743_v62, %v1742_v48  ;;  %v1312_v23 = vrot.slane %v1311_v25, 2 }
 0x169   : > { %v962_v54 = vadd.f32 %v961_v32, %v960_v18  ;;  %v1366_v0 = vrot.slane %v1365_v37, 4  ;;  %v3030_v49 = vadd.f32 %v1988_v43, %v1987_v53  ;;  %v803_v11 = vrot.slane %v802_v7, 2 }
 0x16a   : > { %3800 = vst [vmem:[#allocation44_spill] sm:$0xff] %v3028_v1  ;;  %v1223_v12 = vadd.f32 %v1222_v20, %v1221_v24  ;;  %v1633_v33 = vrot.slane %v2496_v47, 2  ;;  %v3032_v9 = vadd.f32 %v2132_v61, %v2131_v27  ;;  %v3034_v50 = vadd.f32 %v749_v34, %v748_v39 }
 0x16b   : > { %v1367_v57 = vadd.f32 %v1366_v0, %v1365_v37  ;;  %v1531_v17 = vadd.f32 %v1530_v15, %v1529_v45  ;;  %v3036_v26 = vadd.f32 %v909_v51, %v908_v35  ;;  %v1169_v56 = vadd.f32 %v1168_v16, %v1167_v58 }
 0x16c   : > { %3801 = vst [vmem:[#allocation45_spill] sm:$0xff] %v3032_v9  ;;  %3802 = vst [vmem:[#allocation46_spill] sm:$0xff] %v3034_v50  ;;  %v1689_v48 = vsel %vm722_vm1, %v1633_v33, 0.0  ;;  %v1878_v62 = vrot.slane %v2496_v47, 4  ;;  %v1313_v18 = vadd.f32 %v1312_v23, %v1311_v25  ;;  %v963_v32 = vrot.slane %v962_v54, 2 }
 0x16d   : > { %3803 = vst [vmem:[#allocation47_spill] sm:$0xff] %v3036_v26  ;;  %v1690_v53 = vrot.slane %v1689_v48, 4  ;;  %v2022_v43 = vrot.slane %v2496_v47, 6  ;;  %v804_v2 = vadd.f32 %v803_v11, %v802_v7  ;;  %v1224_v20 = vrot.slane %v1223_v12, 2 }
 0x16e   : > { %v1934_v27 = vsel %vm722_vm1, %v1878_v62, 0.0  ;;  %v1585_v39 = vsel %vm722_vm1, %v2520_v55, 0.0  ;;  %v1368_v24 = vrot.slane %v1367_v57, 2  ;;  %v1532_v61 = vrot.slane %v1531_v17, 2 }
 0x16f   : > { %v1691_v45 = vadd.f32 %v1690_v53, %v1689_v48  ;;  %v1935_v34 = vrot.slane %v1934_v27, 4  ;;  %v1170_v35 = vrot.slane %v1169_v56, 1  ;;  %v2078_v58 = vsel %vm722_vm1, %v2022_v43, 0.0  ;;  %v602_v48 = vpop.f32.mrf.mxu0 }
 0x170   : > { %v1586_v51 = vrot.slane %v1585_v39, 4  ;;  %v1641_v16 = vrot.slane %v2520_v55, 2  ;;  %v964_v37 = vadd.f32 %v963_v32, %v962_v54  ;;  %v2079_v23 = vrot.slane %v2078_v58, 4 }
 0x171   : > { %v1692_v25 = vrot.slane %v1691_v45, 2  ;;  %v1936_v15 = vadd.f32 %v1935_v34, %v1934_v27  ;;  %v1314_v47 = vrot.slane %v1313_v18, 1  ;;  %v1886_v11 = vrot.slane %v2520_v55, 4 }
 0x172   : > { %v1587_v7 = vadd.f32 %v1586_v51, %v1585_v39  ;;  %v1745_v0 = vsel %vm722_vm1, %v1641_v16, 0.0  ;;  %v805_v33 = vrot.slane %v804_v2, 1  ;;  %v1225_v62 = vadd.f32 %v1224_v20, %v1223_v12 }
 0x173   : > { %v1369_v26 = vadd.f32 %v1368_v24, %v1367_v57  ;;  %v1533_v50 = vadd.f32 %v1532_v61, %v1531_v17  ;;  %v1937_v53 = vrot.slane %v1936_v15, 2  ;;  %v1746_v9 = vrot.slane %v1745_v0, 4 }
 0x174   : > { %v1990_v43 = vsel %vm722_vm1, %v1886_v11, 0.0  ;;  %v2030_v46 = vrot.slane %v2520_v55, 6  ;;  %v965_v3 = vrot.slane %v964_v37, 1  ;;  %v1693_v54 = vadd.f32 %v1692_v25, %v1691_v45 }
 0x175   : > { %v2080_v32 = vadd.f32 %v2079_v23, %v2078_v58  ;;  %v1991_v27 = vrot.slane %v1990_v43, 4  ;;  %v1588_v34 = vrot.slane %v1587_v7, 2  ;;  %v1747_v44 = vadd.f32 %v1746_v9, %v1745_v0 }
 0x176   : > { %v2134_v39 = vsel %vm722_vm1, %v2030_v46, 0.0  ;;  %v751_v51 = vsel %vm722_vm1, %v602_v48, 0.0  ;;  %v3046_v16 = vadd.f32 %v1170_v35, %v1169_v56  ;;  %v1226_v12 = vrot.slane %v1225_v62, 1  ;;  %v682_v56 = vpop.f32.mrf.mxu1 }
 0x177   : > { %v1370_v57 = vrot.slane %v1369_v26, 1  ;;  %v1534_v17 = vrot.slane %v1533_v50, 1  ;;  %v1938_v20 = vadd.f32 %v1937_v53, %v1936_v15  ;;  %v1992_v24 = vadd.f32 %v1991_v27, %v1990_v43 }
 0x178   : > { %3804 = vst [vmem:[#allocation48_spill] sm:$0xff] %v3046_v16  ;;  %v2135_v61 = vrot.slane %v2134_v39, 4  ;;  %v752_v11 = vrot.slane %v751_v51, 4  ;;  %v3048_v55 = vadd.f32 %v1314_v47, %v1313_v18  ;;  %v3050_v45 = vadd.f32 %v805_v33, %v804_v2 }
 0x179   : > { %v3052_v58 = vadd.f32 %v965_v3, %v964_v37  ;;  %v855_v9 = vrot.slane %v602_v48, 2  ;;  %v1694_v25 = vrot.slane %v1693_v54, 1  ;;  %v2081_v46 = vrot.slane %v2080_v32, 2 }
 0x17a   : > { %3805 = vst [vmem:[#allocation49_spill] sm:$0xff] %v3048_v55  ;;  %3806 = vst [vmem:[#allocation50_spill] sm:$0xff] %v3050_v45  ;;  %v1589_v23 = vadd.f32 %v1588_v34, %v1587_v7  ;;  %v1748_v0 = vrot.slane %v1747_v44, 2  ;;  %v3054_v35 = vadd.f32 %v1226_v12, %v1225_v62  ;;  %v3056_v16 = vadd.f32 %v1534_v17, %v1533_v50 }
 0x17b   : > { %3807 = vst [vmem:[#allocation51_spill] sm:$0xff] %v3052_v58  ;;  %v2136_v15 = vadd.f32 %v2135_v61, %v2134_v39  ;;  %v1116_v53 = vrot.slane %v602_v48, 4  ;;  %v3058_v43 = vadd.f32 %v1370_v57, %v1369_v26  ;;  %v1939_v18 = vrot.slane %v1938_v20, 1 }
 0x17c   : > { %3808 = vst [vmem:[#allocation52_spill] sm:$0xff] %v3054_v35  ;;  %v1993_v47 = vrot.slane %v1992_v24, 2  ;;  %v753_v2 = vadd.f32 %v752_v11, %v751_v51  ;;  %v911_v3 = vsel %vm722_vm1, %v855_v9, 0.0  ;;  %v1260_v33 = vrot.slane %v602_v48, 6 }
 0x17d   : > { %3809 = vst [vmem:[#allocation53_spill] sm:$0xff] %v3058_v43  ;;  %v1172_v37 = vsel %vm722_vm1, %v1116_v53, 0.0  ;;  %v807_v7 = vsel %vm722_vm1, %v682_v56, 0.0  ;;  %v3063_v27 = vadd.f32 %v1694_v25, %v1693_v54  ;;  %v2082_v62 = vadd.f32 %v2081_v46, %v2080_v32 }
 0x17e   : > { %v1590_v34 = vrot.slane %v1589_v23, 1  ;;  %v1749_v50 = vadd.f32 %v1748_v0, %v1747_v44  ;;  %v2137_v12 = vrot.slane %v2136_v15, 2  ;;  %v1173_v39 = vrot.slane %v1172_v37, 4  ;;  %v2499_v44 = vpop.f32.mrf.mxu0 }
 0x17f   : > { %3810 = vst [vmem:[#allocation54_spill] sm:$0xff] %v3063_v27  ;;  %v1316_v26 = vsel %vm722_vm1, %v1260_v33, 0.0  ;;  %v808_v57 = vrot.slane %v807_v7, 4  ;;  %v3066_v17 = vadd.f32 %v1939_v18, %v1938_v20  ;;  %v754_v51 = vrot.slane %v753_v2, 2 }
 0x180   : > { %v912_v61 = vrot.slane %v911_v3, 4  ;;  %v1317_v11 = vrot.slane %v1316_v26, 4  ;;  %v1994_v9 = vadd.f32 %v1993_v47, %v1992_v24  ;;  %v1174_v53 = vadd.f32 %v1173_v39, %v1172_v37 }
 0x181   : > { %3811 = vst [vmem:[#allocation55_spill] sm:$0xff] %v3066_v17  ;;  %v863_v48 = vrot.slane %v682_v56, 2  ;;  %v1124_v58 = vrot.slane %v682_v56, 4  ;;  %v2083_v45 = vrot.slane %v2082_v62, 1  ;;  %v3068_v54 = vadd.f32 %v1590_v34, %v1589_v23 }
 0x182   : > { %v1318_v32 = vadd.f32 %v1317_v11, %v1316_v26  ;;  %v809_v25 = vadd.f32 %v808_v57, %v807_v7  ;;  %v1750_v46 = vrot.slane %v1749_v50, 1  ;;  %v2138_v0 = vadd.f32 %v2137_v12, %v2136_v15 }
 0x183   : > { %v967_v33 = vsel %vm722_vm1, %v863_v48, 0.0  ;;  %v1228_v20 = vsel %vm722_vm1, %v1124_v58, 0.0  ;;  %v755_v18 = vadd.f32 %v754_v51, %v753_v2  ;;  %v913_v55 = vadd.f32 %v912_v61, %v911_v3 }
 0x184   : > { %v968_v43 = vrot.slane %v967_v33, 4  ;;  %v1229_v35 = vrot.slane %v1228_v20, 4  ;;  %v1995_v24 = vrot.slane %v1994_v9, 1  ;;  %v1175_v47 = vrot.slane %v1174_v53, 2 }
 0x185   : > { %v1268_v37 = vrot.slane %v682_v56, 6  ;;  %v1536_v39 = vsel %vm722_vm1, %v2499_v44, 0.0  ;;  %v1319_v23 = vrot.slane %v1318_v32, 2  ;;  %v810_v34 = vrot.slane %v809_v25, 2 }
 0x186   : > { %v969_v26 = vadd.f32 %v968_v43, %v967_v33  ;;  %v1230_v7 = vadd.f32 %v1229_v35, %v1228_v20  ;;  %v3073_v57 = vadd.f32 %v2083_v45, %v2082_v62  ;;  %v2139_v15 = vrot.slane %v2138_v0, 1  ;;  %v2523_v45 = vpop.f32.mrf.mxu1 }
 0x187   : > { %v1372_v12 = vsel %vm722_vm1, %v1268_v37, 0.0  ;;  %v1537_v11 = vrot.slane %v1536_v39, 4  ;;  %v756_v58 = vrot.slane %v755_v18, 1  ;;  %v914_v2 = vrot.slane %v913_v55, 2 }
 0x188   : > { %3812 = vst [vmem:[#allocation56_spill] sm:$0xff] %v3073_v57  ;;  %v970_v3 = vrot.slane %v969_v26, 2  ;;  %v1373_v51 = vrot.slane %v1372_v12, 4  ;;  %v3076_v61 = vadd.f32 %v1750_v46, %v1749_v50  ;;  %v3078_v48 = vadd.f32 %v1995_v24, %v1994_v9 }
 0x189   : > { %v1176_v56 = vadd.f32 %v1175_v47, %v1174_v53  ;;  %v1634_v52 = vrot.slane %v2499_v44, 2  ;;  %v1320_v27 = vadd.f32 %v1319_v23, %v1318_v32  ;;  %v811_v6 = vadd.f32 %v810_v34, %v809_v25 }
 0x18a   : > { %3813 = vst [vmem:[#allocation57_spill] sm:$0xff] %v3076_v61  ;;  %v1231_v43 = vrot.slane %v1230_v7, 2  ;;  %v1374_v35 = vadd.f32 %v1373_v51, %v1372_v12  ;;  %v1538_v62 = vadd.f32 %v1537_v11, %v1536_v39  ;;  %v1879_v20 = vrot.slane %v2499_v44, 4 }
 0x18b   : > { %v1696_v33 = vsel %vm722_vm1, %v1634_v52, 0.0  ;;  %v2023_v37 = vrot.slane %v2499_v44, 6  ;;  %v3081_v57 = vadd.f32 %v2139_v15, %v2138_v0  ;;  %v3083_v31 = vadd.f32 %v756_v58, %v755_v18 }
 0x18c   : > { %v3085_v50 = vadd.f32 %v914_v2, %v913_v55  ;;  %v971_v9 = vadd.f32 %v970_v3, %v969_v26  ;;  %v1375_v46 = vrot.slane %v1374_v35, 2  ;;  %v1941_v53 = vsel %vm722_vm1, %v1879_v20, 0.0  ;;  %v612_v3 = vpop.f32.mrf.mxu0 }
 0x18d   : > { %3814 = vst [vmem:[#allocation58_spill] sm:$0xff] %v3081_v57  ;;  %3815 = vst [vmem:[#allocation59_spill] sm:$0xff] %v3083_v31  ;;  %v2085_v32 = vsel %vm722_vm1, %v2023_v37, 0.0  ;;  %v1592_v25 = vsel %vm722_vm1, %v2523_v45, 0.0  ;;  %v1177_v24 = vrot.slane %v1176_v56, 1  ;;  %v812_v47 = vrot.slane %v811_v6, 1 }
 0x18e   : > { %3816 = vst [vmem:[#allocation60_spill] sm:$0xff] %v3085_v50  ;;  %v1232_v39 = vadd.f32 %v1231_v43, %v1230_v7  ;;  %v1697_v52 = vrot.slane %v1696_v33, 4  ;;  %v1321_v23 = vrot.slane %v1320_v27, 1  ;;  %v1539_v44 = vrot.slane %v1538_v62, 2 }
 0x18f   : > { %v1942_v0 = vrot.slane %v1941_v53, 4  ;;  %v1593_v34 = vrot.slane %v1592_v25, 4  ;;  %v972_v18 = vrot.slane %v971_v9, 1  ;;  %v2086_v15 = vrot.slane %v2085_v32, 4 }
 0x190   : > { %v1642_v55 = vrot.slane %v2523_v45, 2  ;;  %v1887_v12 = vrot.slane %v2523_v45, 4  ;;  %v1376_v11 = vadd.f32 %v1375_v46, %v1374_v35  ;;  %v2031_v2 = vrot.slane %v2523_v45, 6 }
 0x191   : > { %v1594_v58 = vadd.f32 %v1593_v34, %v1592_v25  ;;  %v3091_v51 = vadd.f32 %v1177_v24, %v1176_v56  ;;  %v1233_v20 = vrot.slane %v1232_v39, 1  ;;  %v1698_v37 = vadd.f32 %v1697_v52, %v1696_v33  ;;  %v692_v24 = vpop.f32.mrf.mxu1 }
 0x192   : > { %v1943_v7 = vadd.f32 %v1942_v0, %v1941_v53  ;;  %v3093_v43 = vadd.f32 %v1321_v23, %v1320_v27  ;;  %v3095_v31 = vadd.f32 %v812_v47, %v811_v6  ;;  %v3097_v57 = vadd.f32 %v1539_v44, %v1538_v62 }
 0x193   : > { %3817 = vst [vmem:[#allocation61_spill] sm:$0xff] %v3091_v51  ;;  %v1752_v13 = vsel %vm722_vm1, %v1642_v55, 0.0  ;;  %v3100_v28 = vadd.f32 %v972_v18, %v971_v9  ;;  %v2087_v26 = vadd.f32 %v2086_v15, %v2085_v32  ;;  %v1997_v35 = vsel %vm722_vm1, %v1887_v12, 0.0 }
 0x194   : > { %3818 = vst [vmem:[#allocation62_spill] sm:$0xff] %v3093_v43  ;;  %3819 = vst [vmem:[#allocation63_spill] sm:$0xff] %v3095_v31  ;;  %v856_v45 = vrot.slane %v612_v3, 2  ;;  %v1377_v46 = vrot.slane %v1376_v11, 1  ;;  %v1595_v56 = vrot.slane %v1594_v58, 2  ;;  %v2141_v25 = vsel %vm722_vm1, %v2031_v2, 0.0 }
 0x195   : > { %3820 = vst [vmem:[#allocation64_spill] sm:$0xff] %v3100_v28  ;;  %v758_v33 = vsel %vm722_vm1, %v612_v3, 0.0  ;;  %v3105_v27 = vadd.f32 %v1233_v20, %v1232_v39  ;;  %v1699_v6 = vrot.slane %v1698_v37, 2  ;;  %v1944_v53 = vrot.slane %v1943_v7, 2 }
 0x196   : > { %v1753_v62 = vrot.slane %v1752_v13, 4  ;;  %v1998_v9 = vrot.slane %v1997_v35, 4  ;;  %v918_v32 = vsel %vm722_vm1, %v856_v45, 0.0  ;;  %v1117_v52 = vrot.slane %v612_v3, 4 }
 0x197   : > { %3821 = vst [vmem:[#allocation65_spill] sm:$0xff] %v3105_v27  ;;  %v2088_v23 = vrot.slane %v2087_v26, 2  ;;  %v2142_v44 = vrot.slane %v2141_v25, 4  ;;  %v759_v0 = vrot.slane %v758_v33, 4  ;;  %v1261_v34 = vrot.slane %v612_v3, 6 }
 0x198   : > { %v3109_v18 = vadd.f32 %v1377_v46, %v1376_v11  ;;  %v3111_v15 = vadd.f32 %v1595_v56, %v1594_v58  ;;  %v1179_v39 = vsel %vm722_vm1, %v1117_v52, 0.0  ;;  %v814_v55 = vsel %vm722_vm1, %v692_v24, 0.0  ;;  %v3122_v56 = vpop.f32.mrf.mxu0 }
 0x199   : > { %v3115_v12 = vadd.f32 %v1699_v6, %v1698_v37  ;;  %v3117_v2 = vadd.f32 %v1944_v53, %v1943_v7  ;;  %v1754_v20 = vadd.f32 %v1753_v62, %v1752_v13  ;;  %v919_v47 = vrot.slane %v918_v32, 4 }
 0x19a   : > { %3822 = vst [vmem:[#allocation66_spill] sm:$0xff] %v3109_v18  ;;  %v1999_v45 = vadd.f32 %v1998_v9, %v1997_v35  ;;  %v1323_v28 = vsel %vm722_vm1, %v1261_v34, 0.0  ;;  %v815_v50 = vrot.slane %v814_v55, 4  ;;  %v864_v31 = vrot.slane %v692_v24, 2 }
 0x19b   : > { %3823 = vst [vmem:[#allocation67_spill] sm:$0xff] %v3115_v12  ;;  %v3120_v3 = vadd.f32 %v2088_v23, %v2087_v26  ;;  %v2143_v11 = vadd.f32 %v2142_v44, %v2141_v25  ;;  %v760_v58 = vadd.f32 %v759_v0, %v758_v33  ;;  %v1180_v46 = vrot.slane %v1179_v39, 4 }
 0x19c   : > { %v1324_v37 = vrot.slane %v1323_v28, 4  ;;  %v974_v7 = vsel %vm722_vm1, %v864_v31, 0.0  ;;  %v1125_v6 = vrot.slane %v692_v24, 4  ;;  %v1755_v13 = vrot.slane %v1754_v20, 2 }
 0x19d   : > { %3824 = vst [vmem:[#allocation68_spill] sm:$0xff] %v3120_v3  ;;  %v920_v53 = vadd.f32 %v919_v47, %v918_v32  ;;  %v816_v35 = vadd.f32 %v815_v50, %v814_v55  ;;  %v975_v62 = vrot.slane %v974_v7, 4  ;;  %v2000_v9 = vrot.slane %v1999_v45, 2 }
 0x19e   : > { %v1235_v34 = vsel %vm722_vm1, %v1125_v6, 0.0  ;;  %v1269_v26 = vrot.slane %v692_v24, 6  ;;  %v1543_v25 = vsel %vm722_vm1, %v3122_v56, 0.0  ;;  %v2144_v33 = vrot.slane %v2143_v11, 2 }
 0x19f   : > { %v761_v23 = vrot.slane %v760_v58, 2  ;;  %v1181_v44 = vadd.f32 %v1180_v46, %v1179_v39  ;;  %v1236_v0 = vrot.slane %v1235_v34, 4  ;;  %v1325_v52 = vadd.f32 %v1324_v37, %v1323_v28  ;;  %v2526_v37 = vpop.f32.mrf.mxu1 }
 0x1a0   : > { %v1379_v3 = vsel %vm722_vm1, %v1269_v26, 0.0  ;;  %v1544_v31 = vrot.slane %v1543_v25, 4  ;;  %v1635_v43 = vrot.slane %v3122_v56, 2  ;;  %v921_v47 = vrot.slane %v920_v53, 2 }
 0x1a1   : > { %v817_v50 = vrot.slane %v816_v35, 2  ;;  %v976_v32 = vadd.f32 %v975_v62, %v974_v7  ;;  %v1380_v55 = vrot.slane %v1379_v3, 4  ;;  %v3131_v18 = vadd.f32 %v1755_v13, %v1754_v20 }
 0x1a2   : > { %v1237_v24 = vadd.f32 %v1236_v0, %v1235_v34  ;;  %v1703_v6 = vsel %vm722_vm1, %v1635_v43, 0.0  ;;  %v1880_v51 = vrot.slane %v3122_v56, 4  ;;  %v3135_v27 = vadd.f32 %v2000_v9, %v1999_v45  ;;  %v622_v9 = vpop.f32.mrf.mxu0 }
 0x1a3   : > { %v3137_v39 = vadd.f32 %v761_v23, %v760_v58  ;;  %v1381_v28 = vadd.f32 %v1380_v55, %v1379_v3  ;;  %v1545_v46 = vadd.f32 %v1544_v31, %v1543_v25  ;;  %v3139_v26 = vadd.f32 %v2144_v33, %v2143_v11 }
 0x1a4   : > { %v1182_v61 = vrot.slane %v1181_v44, 2  ;;  %v1326_v1 = vrot.slane %v1325_v52, 2  ;;  %v1948_v7 = vsel %vm722_vm1, %v1880_v51, 0.0  ;;  %v3142_v20 = vadd.f32 %v921_v47, %v920_v53 }
 0x1a5   : > { %3825 = vst [vmem:[#allocation69_spill] sm:$0xff] %v3137_v39  ;;  %3826 = vst [vmem:[#allocation70_spill] sm:$0xff] %v3139_v26  ;;  %v3144_v13 = vadd.f32 %v817_v50, %v816_v35  ;;  %v977_v43 = vrot.slane %v976_v32, 2  ;;  %v1704_v62 = vrot.slane %v1703_v6, 4  ;;  %v1238_v34 = vrot.slane %v1237_v24, 2 }
 0x1a6   : > { %3827 = vst [vmem:[#allocation71_spill] sm:$0xff] %v3142_v20  ;;  %v1949_v45 = vrot.slane %v1948_v7, 4  ;;  %v2024_v58 = vrot.slane %v3122_v56, 6  ;;  %v1599_v3 = vsel %vm722_vm1, %v2526_v37, 0.0  ;;  %v1382_v25 = vrot.slane %v1381_v28, 2 }
 0x1a7   : > { %3828 = vst [vmem:[#allocation72_spill] sm:$0xff] %v3144_v13  ;;  %v1546_v33 = vrot.slane %v1545_v46, 2  ;;  %v1643_v23 = vrot.slane %v2526_v37, 2  ;;  %v3149_v0 = vadd.f32 %v1182_v61, %v1181_v44  ;;  %v3151_v51 = vadd.f32 %v1326_v1, %v1325_v52 }
 0x1a8   : > { %v1888_v53 = vrot.slane %v2526_v37, 4  ;;  %v2032_v35 = vrot.slane %v2526_v37, 6  ;;  %v3154_v47 = vadd.f32 %v1704_v62, %v1703_v6  ;;  %v1600_v50 = vrot.slane %v1599_v3, 4  ;;  %v702_v6 = vpop.f32.mrf.mxu1 }
 0x1a9   : > { %3829 = vst [vmem:[#allocation73_spill] sm:$0xff] %v3149_v0  ;;  %3830 = vst [vmem:[#allocation74_spill] sm:$0xff] %v3151_v51  ;;  %v765_v56 = vsel %vm722_vm1, %v622_v9, 0.0  ;;  %v3157_v55 = vadd.f32 %v977_v43, %v976_v32  ;;  %v3159_v20 = vadd.f32 %v1238_v34, %v1237_v24  ;;  %v3161_v11 = vadd.f32 %v1949_v45, %v1948_v7 }
 0x1aa   : > { %3831 = vst [vmem:[#allocation75_spill] sm:$0xff] %v3154_v47  ;;  %v2092_v61 = vsel %vm722_vm1, %v2024_v58, 0.0  ;;  %v3164_v44 = vadd.f32 %v1382_v25, %v1381_v28  ;;  %v3166_v1 = vadd.f32 %v1546_v33, %v1545_v46  ;;  %v1759_v52 = vsel %vm722_vm1, %v1643_v23, 0.0 }
 0x1ab   : > { %3832 = vst [vmem:[#allocation76_spill] sm:$0xff] %v3157_v55  ;;  %3833 = vst [vmem:[#allocation77_spill] sm:$0xff] %v3159_v20  ;;  %v766_v37 = vrot.slane %v765_v56, 4  ;;  %v2004_v62 = vsel %vm722_vm1, %v1888_v53, 0.0  ;;  %v2148_v31 = vsel %vm722_vm1, %v2032_v35, 0.0  ;;  %v857_v32 = vrot.slane %v622_v9, 2  ;;  %v3176_v35 = vpop.f32.mrf.mxu0 }
 0x1ac   : > { %3834 = vst [vmem:[#allocation78_spill] sm:$0xff] %v3164_v44  ;;  %v1118_v43 = vrot.slane %v622_v9, 4  ;;  %v2093_v7 = vrot.slane %v2092_v61, 4  ;;  %v1601_v34 = vadd.f32 %v1600_v50, %v1599_v3  ;;  %v1262_v45 = vrot.slane %v622_v9, 6 }
 0x1ad   : > { %v925_v46 = vsel %vm722_vm1, %v857_v32, 0.0  ;;  %v821_v25 = vsel %vm722_vm1, %v702_v6, 0.0  ;;  %v1760_v33 = vrot.slane %v1759_v52, 4  ;;  %v2005_v23 = vrot.slane %v2004_v62, 4 }
 0x1ae   : > { %v1186_v58 = vsel %vm722_vm1, %v1118_v43, 0.0  ;;  %v2149_v53 = vrot.slane %v2148_v31, 4  ;;  %v767_v39 = vadd.f32 %v766_v37, %v765_v56  ;;  %v926_v55 = vrot.slane %v925_v46, 4 }
 0x1af   : > { %v1330_v24 = vsel %vm722_vm1, %v1262_v45, 0.0  ;;  %v822_v13 = vrot.slane %v821_v25, 4  ;;  %v865_v3 = vrot.slane %v702_v6, 2  ;;  %v3179_v9 = vadd.f32 %v2093_v7, %v2092_v61 }
 0x1b0   : > { %v1602_v50 = vrot.slane %v1601_v34, 2  ;;  %v1187_v28 = vrot.slane %v1186_v58, 4  ;;  %v1126_v32 = vrot.slane %v702_v6, 4  ;;  %v1331_v26 = vrot.slane %v1330_v24, 4 }
 0x1b1   : > { %3835 = vst [vmem:[#allocation79_spill] sm:$0xff] %v3179_v9  ;;  %v981_v43 = vsel %vm722_vm1, %v865_v3, 0.0  ;;  %v1270_v51 = vrot.slane %v702_v6, 6  ;;  %v1550_v44 = vsel %vm722_vm1, %v3176_v35, 0.0  ;;  %v3184_v56 = vadd.f32 %v1760_v33, %v1759_v52 }
 0x1b2   : > { %v3186_v37 = vadd.f32 %v2005_v23, %v2004_v62  ;;  %v3188_v0 = vadd.f32 %v2149_v53, %v2148_v31  ;;  %v823_v45 = vadd.f32 %v822_v13, %v821_v25  ;;  %v768_v20 = vrot.slane %v767_v39, 2  ;;  %v632_v25 = vpop.f32.mrf.mxu0 }
 0x1b3   : > { %3836 = vst [vmem:[#allocation80_spill] sm:$0xff] %v3184_v56  ;;  %v3190_v61 = vadd.f32 %v926_v55, %v925_v46  ;;  %v982_v7 = vrot.slane %v981_v43, 4  ;;  %v1242_v47 = vsel %vm722_vm1, %v1126_v32, 0.0  ;;  %v3193_v30 = vadd.f32 %v1187_v28, %v1186_v58  ;;  %v2529_v58 = vpop.f32.mrf.mxu1  ;;  %v2587_v55 = vld [vmem:[%s2808_s20] sm:$0xff] }
 0x1b4   : > { %3837 = vst [vmem:[#allocation81_spill] sm:$0xff] %v3188_v0  ;;  %v1243_v3 = vrot.slane %v1242_v47, 4  ;;  %v1386_v6 = vsel %vm722_vm1, %v1270_v51, 0.0  ;;  %v1551_v12 = vrot.slane %v1550_v44, 4  ;;  %v3197_v33 = vadd.f32 %v1602_v50, %v1601_v34 }
 0x1b5   : > { %3838 = vst [vmem:[#allocation82_spill] sm:$0xff] %v3190_v61  ;;  %3839 = vst [vmem:[#allocation83_spill] sm:$0xff] %v3193_v30  ;;  %v3199_v62 = vadd.f32 %v1331_v26, %v1330_v24  ;;  %v1636_v13 = vrot.slane %v3176_v35, 2  ;;  %v824_v46 = vrot.slane %v823_v45, 2  ;;  %v1881_v28 = vrot.slane %v3176_v35, 4 }
 0x1b6   : > { %v3206_v51 = vadd.f32 %v768_v20, %v767_v39  ;;  %v3208_v23 = vadd.f32 %v982_v7, %v981_v43  ;;  %v1387_v34 = vrot.slane %v1386_v6, 4  ;;  %v3212_v53 = vadd.f32 %v1243_v3, %v1242_v47 }
 0x1b7   : > { %3840 = vst [vmem:[#allocation84_spill] sm:$0xff] %v3199_v62  ;;  %v3214_v50 = vadd.f32 %v1551_v12, %v1550_v44  ;;  %v1710_v52 = vsel %vm722_vm1, %v1636_v13, 0.0  ;;  %v2025_v31 = vrot.slane %v3176_v35, 6  ;;  %v1606_v39 = vsel %vm722_vm1, %v2529_v58, 0.0 }
 0x1b8   : > { %3841 = vst [vmem:[#allocation85_spill] sm:$0xff] %v3206_v51  ;;  %3842 = vst [vmem:[#allocation86_spill] sm:$0xff] %v3208_v23  ;;  %v3220_v20 = vadd.f32 %v824_v46, %v823_v45  ;;  %v1955_v43 = vsel %vm722_vm1, %v1881_v28, 0.0  ;;  %v1644_v7 = vrot.slane %v2529_v58, 2  ;;  %v1889_v26 = vrot.slane %v2529_v58, 4  ;;  %v712_v45 = vpop.f32.mrf.mxu1 }
 0x1b9   : > { %3843 = vst [vmem:[#allocation87_spill] sm:$0xff] %v3212_v53  ;;  %v3224_v12 = vadd.f32 %v1387_v34, %v1386_v6  ;;  %v2033_v44 = vrot.slane %v2529_v58, 6  ;;  %v1711_v35 = vrot.slane %v1710_v52, 4  ;;  %v1607_v32 = vrot.slane %v1606_v39, 4 }
 0x1ba   : > { %3844 = vst [vmem:[#allocation88_spill] sm:$0xff] %v3220_v20  ;;  %v2630_v24 = vmov 3   ;;  %v1956_v46 = vrot.slane %v1955_v43, 4  ;;  %v2099_v28 = vsel %vm722_vm1, %v2025_v31, 0.0  ;;  %v772_v61 = vsel %vm722_vm1, %v632_v25, 0.0 }
 0x1bb   : > { %2585 = vset.pattern.permute.xlu1 %v2630_v24  ;;  %v1766_v6 = vsel %vm722_vm1, %v1644_v7, 0.0  ;;  %v2011_v58 = vsel %vm722_vm1, %v1889_v26, 0.0  ;;  %v2631_v34 = vmov 1   ;;  %v773_v47 = vrot.slane %v772_v61, 4 }
 0x1bc   : > { %1096 = vperm.xlu1 %2585, %v2587_v55   ;;  %2583 = vset.pattern.permute.xlu0 %v2631_v34  ;;  %v858_v3 = vrot.slane %v632_v25, 2  ;;  %v2155_v13 = vsel %vm722_vm1, %v2033_v44, 0.0  ;;  %v1119_v23 = vrot.slane %v632_v25, 4  ;;  %v1263_v51 = vrot.slane %v632_v25, 6 }
 0x1bd   : > { %1042 = vperm.xlu0 %2583, %v2587_v55   ;;  %v828_v20 = vsel %vm722_vm1, %v712_v45, 0.0  ;;  %v2100_v31 = vrot.slane %v2099_v28, 4  ;;  %v1608_v9 = vadd.f32 %v1607_v32, %v1606_v39  ;;  %v1767_v30 = vrot.slane %v1766_v6, 4 }
 0x1be   : > { %v932_v0 = vsel %vm722_vm1, %v858_v3, 0.0  ;;  %v829_v62 = vrot.slane %v828_v20, 4  ;;  %v1193_v7 = vsel %vm722_vm1, %v1119_v23, 0.0  ;;  %v1337_v26 = vsel %vm722_vm1, %v1263_v51, 0.0 }
 0x1bf   : > { %v1127_v34 = vrot.slane %v712_v45, 4  ;;  %v2012_v53 = vrot.slane %v2011_v58, 4  ;;  %v2156_v4 = vrot.slane %v2155_v13, 4  ;;  %v3238_v41 = vadd.f32 %v773_v47, %v772_v61 }
 0x1c0   : > { %v933_v55 = vrot.slane %v932_v0, 4  ;;  %v1194_v44 = vrot.slane %v1193_v7, 4  ;;  %v1338_v25 = vrot.slane %v1337_v26, 4  ;;  %v3240_v17 = vadd.f32 %v829_v62, %v828_v20 }
 0x1c1   : > { %v866_v14 = vrot.slane %v712_v45, 2  ;;  %2586 = vset.pattern.permute.xlu0 %v2630_v24  ;;  %v1389_v32 = vrot.slane %v3224_v12, 2  ;;  %v3243_v39 = vadd.f32 %v1711_v35, %v1710_v52  ;;  %v3245_v3 = vadd.f32 %v1956_v46, %v1955_v43 }
 0x1c2   : > { %v1271_v23 = vrot.slane %v712_v45, 6  ;;  %v3247_v51 = vadd.f32 %v2100_v31, %v2099_v28  ;;  %v1609_v56 = vrot.slane %v1608_v9, 2  ;;  %v3249_v19 = vadd.f32 %v1767_v30, %v1766_v6 }
 0x1c3   : > { %v3252_v61 = vsel %vm722_vm1, %v1127_v34, 0.0  ;;  %v2013_v47 = vadd.f32 %v2012_v53, %v2011_v58  ;;  %v3254_v62 = vadd.f32 %v2156_v4, %v2155_v13  ;;  %v775_v24 = vrot.slane %v3238_v41, 2 }
 0x1c4   : > { %v3257_v20 = vadd.f32 %v933_v55, %v932_v0  ;;  %v3259_v52 = vadd.f32 %v1194_v44, %v1193_v7  ;;  %v3261_v43 = vadd.f32 %v1338_v25, %v1337_v26  ;;  %v831_v35 = vrot.slane %v3240_v17, 2 }
 0x1c5   : > { %v3265_v45 = vsel %vm722_vm1, %v866_v14, 0.0  ;;  %v1250_v30 = vrot.slane %v3252_v61, 4  ;;  %v3269_v46 = vsel %vm722_vm1, %v1271_v23, 0.0  ;;  %v3845_v4 = vrot.slane %v3111_v15, 1 }
 0x1c6   : > { %v1604_v53 = vrot.slane %v3197_v33, 1  ;;  %v1610_v14 = vadd.f32 %v1609_v56, %v1608_v9  ;;  %v1796_v13 = vsel %vm1016_vm2, %v2930_v60, %v2877_v29  ;;  %v3846_v28 = vrot.slane %v3097_v57, 1 }
 0x1c7   : > { %v1598_v0 = vadd.f32 %v3845_v4, %v3111_v15  ;;  %v1548_v58 = vrot.slane %v3166_v1, 1  ;;  %v3847_v31 = vrot.slane %v3214_v50, 2  ;;  %v1797_v9 = vsel %vm1018_vm3, %v2977_v38, %v1796_v13 }
 0x1c8   : > { %v1542_v6 = vadd.f32 %v3846_v28, %v3097_v57  ;;  %v1605_v26 = vadd.f32 %v1604_v53, %v3197_v33  ;;  %v1611_v15 = vrot.slane %v1610_v14, 1  ;;  %v1789_v29 = vsel %vm1016_vm2, %v2916_v5, %v2867_v59 }
 0x1c9   : > { %v1554_v7 = vadd.f32 %v3847_v31, %v3214_v50  ;;  %v1798_v60 = vsel %vm1020_vm4, %v3025_v10, %v1797_v9  ;;  %v1549_v57 = vadd.f32 %v1548_v58, %v3166_v1  ;;  %v1790_v34 = vsel %vm1018_vm3, %v2965_v21, %v1789_v29 }
 0x1ca   : > { %v1612_v50 = vadd.f32 %v1611_v15, %v1610_v14  ;;  %v1799_v33 = vsel %vm1022_vm5, %v3068_v54, %v1798_v60  ;;  %v1791_v38 = vsel %vm1020_vm4, %v3008_v63, %v1790_v34  ;;  %v2002_v55 = vrot.slane %v3135_v27, 1 }
 0x1cb   : > { %v1555_v56 = vrot.slane %v1554_v7, 1  ;;  %v1800_v59 = vsel %vm1024_vm6, %v1598_v0, %v1799_v33  ;;  %v1792_v10 = vsel %vm1022_vm5, %v3056_v16, %v1791_v38  ;;  %v3848_v1 = vrot.slane %v3186_v37, 2  ;;  %v3853_v38 = vld [vmem:[#allocation42_spill] sm:$0xff] }
 0x1cc   : > { %v1801_v21 = vsel %vm1026_vm7, %v1605_v26, %v1800_v59  ;;  %v1793_v25 = vsel %vm1024_vm6, %v1542_v6, %v1792_v10  ;;  %v2003_v54 = vadd.f32 %v2002_v55, %v3135_v27  ;;  %v2014_v23 = vrot.slane %v2013_v47, 2 }
 0x1cd   : > { %v1556_v5 = vadd.f32 %v1555_v56, %v1554_v7  ;;  %v2008_v44 = vadd.f32 %v3848_v1, %v3186_v37  ;;  %v3311_v63 = vsel %vm1028_vm8, %v1612_v50, %v1801_v21  ;;  %v1794_v4 = vsel %vm1026_vm7, %v1549_v57, %v1793_v25  ;;  %v3850_v57 = vld [vmem:[#allocation29_spill] sm:$0xff]  ;;  %v3855_v21 = vld [vmem:[#allocation6_spill] sm:$0xff] }
 0x1ce   : > { %v2185_v16 = vsel %vm1016_vm2, %v2934_v8, %v2886_v40  ;;  %v1196_v53 = vrot.slane %v3259_v52, 2  ;;  %1809 = vrot.lane.b32.xlu0 %v3311_v63, %s2632_s23  ;;  %v2015_v27 = vadd.f32 %v2014_v23, %v2013_v47  ;;  %v1394_v13 = vrot.slane %v3269_v46, 4  ;;  %v3856_v25 = vld [vmem:[#allocation18_spill] sm:$0xff]  ;;  %v3857_v23 = vld [vmem:[#allocation67_spill] sm:$0xff] }
 0x1cf   : > { %v2009_v0 = vrot.slane %v2008_v44, 1  ;;  %v3321_v37 = vsel %vm1028_vm8, %v1556_v5, %v1794_v4  ;;  %v2186_v14 = vsel %vm1018_vm3, %v2982_v22, %v2185_v16  ;;  %v1946_v8 = vrot.slane %v3117_v2, 1 }
 0x1d0   : > { %1807 = vrot.lane.b32.xlu1 %v3321_v37, %s2632_s23  ;;  %v2187_v40 = vsel %vm1020_vm4, %v3030_v49, %v2186_v14  ;;  %v2016_v6 = vrot.slane %v2015_v27, 1  ;;  %v3849_v47 = vrot.slane %v3161_v11, 2  ;;  %v1958_v22 = vrot.slane %v3245_v3, 2  ;;  %v3858_v14 = vld [vmem:[#allocation31_spill] sm:$0xff] }
 0x1d1   : > { %v2010_v28 = vadd.f32 %v2009_v0, %v2008_v44  ;;  %v2188_v58 = vsel %vm1022_vm5, %v3078_v48, %v2187_v40  ;;  %v1251_v7 = vadd.f32 %v1250_v30, %v3252_v61  ;;  %v1947_v15 = vadd.f32 %v1946_v8, %v3117_v2  ;;  %v3851_v61 = vld [vmem:[#allocation80_spill] sm:$0xff] }
 0x1d2   : > { %v1952_v31 = vadd.f32 %v3849_v47, %v3161_v11  ;;  %v2189_v26 = vsel %vm1024_vm6, %v2003_v54, %v2188_v58  ;;  %v1757_v49 = vrot.slane %v3131_v18, 1  ;;  %v2017_v9 = vadd.f32 %v2016_v6, %v2015_v27  ;;  %v3859_v40 = vld [vmem:[#allocation44_spill] sm:$0xff]  ;;  %v3860_v6 = vld [vmem:[#allocation75_spill] sm:$0xff] }
 0x1d3   : > { %v1959_v60 = vadd.f32 %v1958_v22, %v3245_v3  ;;  %v2178_v48 = vsel %vm1016_vm2, %v2924_v42, %v2879_v36  ;;  %v2190_v11 = vsel %vm1026_vm7, %v2010_v28, %v2189_v26  ;;  %v3852_v30 = vrot.slane %v3851_v61, 2  ;;  %v3854_v36 = vld [vmem:[#allocation55_spill] sm:$0xff]  ;;  %v3862_v26 = vld [vmem:[#allocation57_spill] sm:$0xff] }
 0x1d4   : > { %v1953_v29 = vrot.slane %v1952_v31, 1  ;;  %v2179_v56 = vsel %vm1018_vm3, %v3850_v57, %v2178_v48  ;;  %v1769_v2 = vrot.slane %v3249_v19, 2  ;;  %v3353_v50 = vsel %vm1028_vm8, %v2017_v9, %v2190_v11  ;;  %v3864_v57 = vld [vmem:[#allocation4_spill] sm:$0xff] }
 0x1d5   : > { %v1763_v34 = vadd.f32 %v3852_v30, %v3851_v61  ;;  %v1960_v3 = vrot.slane %v1959_v60, 1  ;;  %v2180_v55 = vsel %vm1020_vm4, %v3853_v38, %v2179_v56  ;;  %2198 = vrot.lane.b32.xlu0 %v3353_v50, %s2632_s23  ;;  %v1758_v59 = vadd.f32 %v1757_v49, %v3131_v18  ;;  %v3865_v56 = vld [vmem:[#allocation16_spill] sm:$0xff]  ;;  %v3866_v30 = vld [vmem:[#allocation87_spill] sm:$0xff] }
 0x1d6   : > { %v1954_v33 = vadd.f32 %v1953_v29, %v1952_v31  ;;  %v2181_v42 = vsel %vm1022_vm5, %v3854_v36, %v2180_v55  ;;  %v1770_v10 = vadd.f32 %v1769_v2, %v3249_v19  ;;  %v1840_v54 = vsel %vm1016_vm2, %v3856_v25, %v3855_v21  ;;  %v3863_v29 = vld [vmem:[#allocation77_spill] sm:$0xff]  ;;  %v3868_v55 = vld [vmem:[#allocation28_spill] sm:$0xff]  ;;  %v3871_v25 = vld [vmem:[#allocation14_spill] sm:$0xff] }
 0x1d7   : > { %v1764_v5 = vrot.slane %v1763_v34, 1  ;;  %v1961_v1 = vadd.f32 %v1960_v3, %v1959_v60  ;;  %v2182_v44 = vsel %vm1024_vm6, %v1947_v15, %v2181_v42  ;;  %v1701_v4 = vrot.slane %v3857_v23, 1  ;;  %v3869_v42 = vld [vmem:[#allocation41_spill] sm:$0xff] }
 0x1d8   : > { %v2183_v0 = vsel %vm1026_vm7, %v1954_v33, %v2182_v44  ;;  %v1771_v27 = vrot.slane %v1770_v10, 1  ;;  %v1841_v28 = vsel %vm1018_vm3, %v3858_v14, %v1840_v54  ;;  %v1395_v18 = vadd.f32 %v1394_v13, %v3269_v46  ;;  %v3872_v54 = vld [vmem:[#allocation26_spill] sm:$0xff] }
 0x1d9   : > { %v1765_v16 = vadd.f32 %v1764_v5, %v1763_v34  ;;  %v3373_v19 = vsel %vm1028_vm8, %v1961_v1, %v2183_v0  ;;  %v1842_v8 = vsel %vm1020_vm4, %v3859_v40, %v1841_v28  ;;  %v3861_v58 = vrot.slane %v3860_v6, 2  ;;  %v3870_v1 = vld [vmem:[#allocation54_spill] sm:$0xff]  ;;  %v3874_v28 = vld [vmem:[#allocation39_spill] sm:$0xff] }
 0x1da   : > { %v1252_v31 = vrot.slane %v1251_v7, 2  ;;  %2196 = vrot.lane.b32.xlu1 %v3373_v19, %s2632_s23  ;;  %v1772_v22 = vadd.f32 %v1771_v27, %v1770_v10  ;;  %v1843_v15 = vsel %vm1022_vm5, %v3862_v26, %v1842_v8  ;;  %v1713_v46 = vrot.slane %v3243_v39, 2 }
 0x1db   : > { %v1707_v47 = vadd.f32 %v3861_v58, %v3860_v6  ;;  %v1844_v13 = vsel %vm1024_vm6, %v1758_v59, %v1843_v15  ;;  %v1702_v49 = vadd.f32 %v1701_v4, %v3857_v23  ;;  %v1240_v60 = vrot.slane %v3863_v29, 1  ;;  %v3873_v4 = vld [vmem:[#allocation73_spill] sm:$0xff]  ;;  %v3875_v58 = vld [vmem:[#allocation52_spill] sm:$0xff] }
 0x1dc   : > { %v1845_v48 = vsel %vm1026_vm7, %v1765_v16, %v1844_v13  ;;  %v1714_v11 = vadd.f32 %v1713_v46, %v3243_v39  ;;  %v1833_v61 = vsel %vm1016_vm2, %v3865_v56, %v3864_v57  ;;  %v3867_v34 = vrot.slane %v3866_v30, 2  ;;  %v3878_v15 = vld [vmem:[#allocation65_spill] sm:$0xff] }
 0x1dd   : > { %v1708_v9 = vrot.slane %v1707_v47, 1  ;;  %v1396_v33 = vrot.slane %v1395_v18, 2  ;;  %v3397_v3 = vsel %vm1028_vm8, %v1772_v22, %v1845_v48  ;;  %v1834_v36 = vsel %vm1018_vm3, %v3868_v55, %v1833_v61  ;;  %v3879_v48 = vld [vmem:[#allocation11_spill] sm:$0xff]  ;;  %v3883_v55 = vld [vmem:[#allocation48_spill] sm:$0xff] }
 0x1de   : > { %v1246_v2 = vadd.f32 %v3867_v34, %v3866_v30  ;;  %1855 = vrot.lane.b32.xlu0 %v3397_v3, %s2632_s23  ;;  %v1715_v39 = vrot.slane %v1714_v11, 1  ;;  %v1835_v59 = vsel %vm1020_vm4, %v3869_v42, %v1834_v36  ;;  %v1241_v5 = vadd.f32 %v1240_v60, %v3863_v29  ;;  %v3881_v30 = vld [vmem:[#allocation35_spill] sm:$0xff] }
 0x1df   : > { %v1709_v38 = vadd.f32 %v1708_v9, %v1707_v47  ;;  %v1836_v44 = vsel %vm1022_vm5, %v3870_v1, %v1835_v59  ;;  %v1253_v21 = vadd.f32 %v1252_v31, %v1251_v7  ;;  %v1423_v23 = vsel %vm1016_vm2, %v3872_v54, %v3871_v25  ;;  %v3876_v7 = vld [vmem:[#allocation83_spill] sm:$0xff] }
 0x1e0   : > { %v1247_v10 = vrot.slane %v1246_v2, 1  ;;  %v1184_v0 = vrot.slane %v3873_v4, 1  ;;  %v1716_v16 = vadd.f32 %v1715_v39, %v1714_v11  ;;  %v1837_v27 = vsel %vm1024_vm6, %v1702_v49, %v1836_v44  ;;  %v3880_v11 = vld [vmem:[#allocation23_spill] sm:$0xff] }
 0x1e1   : > { %v1424_v40 = vsel %vm1018_vm3, %v3874_v28, %v1423_v23  ;;  %v1838_v8 = vsel %vm1026_vm7, %v1709_v38, %v1837_v27  ;;  %v1254_v6 = vrot.slane %v1253_v21, 1  ;;  %v3877_v31 = vrot.slane %v3876_v7, 2  ;;  %v3885_v54 = vld [vmem:[#allocation15_spill] sm:$0xff] }
 0x1e2   : > { %v1248_v14 = vadd.f32 %v1247_v10, %v1246_v2  ;;  %v1425_v47 = vsel %vm1020_vm4, %v3875_v58, %v1424_v40  ;;  %v3422_v26 = vsel %vm1028_vm8, %v1716_v16, %v1838_v8  ;;  %v1185_v13 = vadd.f32 %v1184_v0, %v3873_v4  ;;  %v3882_v2 = vld [vmem:[#allocation78_spill] sm:$0xff]  ;;  %v3886_v23 = vld [vmem:[#allocation27_spill] sm:$0xff] }
 0x1e3   : > { %v1190_v22 = vadd.f32 %v3877_v31, %v3876_v7  ;;  %v1426_v46 = vsel %vm1022_vm5, %v3878_v15, %v1425_v47  ;;  %v1197_v49 = vadd.f32 %v1196_v53, %v3259_v52  ;;  %1853 = vrot.lane.b32.xlu1 %v3422_v26, %s2632_s23  ;;  %v1255_v9 = vadd.f32 %v1254_v6, %v1253_v21  ;;  %v3888_v16 = vld [vmem:[#allocation74_spill] sm:$0xff] }
 0x1e4   : > { %v1427_v29 = vsel %vm1024_vm6, %v1241_v5, %v1426_v46  ;;  %v1416_v57 = vsel %vm1016_vm2, %v3880_v11, %v3879_v48  ;;  %v1384_v38 = vrot.slane %v3882_v2, 1  ;;  %v1390_v39 = vadd.f32 %v1389_v32, %v3224_v12  ;;  %v3884_v5 = vld [vmem:[#allocation61_spill] sm:$0xff]  ;;  %v3887_v32 = vld [vmem:[#allocation40_spill] sm:$0xff]  ;;  %v3892_v7 = vld [vmem:[#allocation66_spill] sm:$0xff] }
 0x1e5   : > { %v1191_v60 = vrot.slane %v1190_v22, 1  ;;  %v1428_v56 = vsel %vm1026_vm7, %v1248_v14, %v1427_v29  ;;  %v1198_v61 = vrot.slane %v1197_v49, 1  ;;  %v1417_v34 = vsel %vm1018_vm3, %v3881_v30, %v1416_v57  ;;  %v3889_v14 = vld [vmem:[#allocation84_spill] sm:$0xff]  ;;  %v3895_v57 = vld [vmem:[#allocation37_spill] sm:$0xff] }
 0x1e6   : > { %v3441_v52 = vsel %vm1028_vm8, %v1255_v9, %v1428_v56  ;;  %v1418_v36 = vsel %vm1020_vm4, %v3883_v55, %v1417_v34  ;;  %v1340_v42 = vrot.slane %v3261_v43, 2  ;;  %v1385_v1 = vadd.f32 %v1384_v38, %v3882_v2  ;;  %v3893_v9 = vld [vmem:[#allocation12_spill] sm:$0xff]  ;;  %v3897_v38 = vld [vmem:[#allocation49_spill] sm:$0xff] }
 0x1e7   : > { %v1192_v53 = vadd.f32 %v1191_v60, %v1190_v22  ;;  %1436 = vrot.lane.b32.xlu0 %v3441_v52, %s2632_s23  ;;  %v1199_v59 = vadd.f32 %v1198_v61, %v1197_v49  ;;  %v1419_v10 = vsel %vm1022_vm5, %v3884_v5, %v1418_v36  ;;  %v1391_v21 = vrot.slane %v1390_v39, 1  ;;  %v3894_v29 = vld [vmem:[#allocation24_spill] sm:$0xff]  ;;  %v3896_v61 = vld [vmem:[#allocation70_spill] sm:$0xff] }
 0x1e8   : > { %v1420_v44 = vsel %vm1024_vm6, %v1185_v13, %v1419_v10  ;;  %v1397_v25 = vadd.f32 %v1396_v33, %v1395_v18  ;;  %v1467_v4 = vsel %vm1016_vm2, %v3886_v23, %v3885_v54  ;;  %v1328_v27 = vrot.slane %v3888_v16, 1  ;;  %v3891_v33 = vld [vmem:[#allocation53_spill] sm:$0xff]  ;;  %v3902_v54 = vld [vmem:[#allocation19_spill] sm:$0xff] }
 0x1e9   : > { %v1421_v12 = vsel %vm1026_vm7, %v1192_v53, %v1420_v44  ;;  %v1468_v0 = vsel %vm1018_vm3, %v3887_v32, %v1467_v4  ;;  %v3890_v28 = vrot.slane %v3889_v14, 2  ;;  %v1392_v6 = vadd.f32 %v1391_v21, %v1390_v39  ;;  %v3903_v4 = vld [vmem:[#allocation32_spill] sm:$0xff] }
 0x1ea   : > { %v3466_v8 = vsel %vm1028_vm8, %v1199_v59, %v1421_v12  ;;  %v1398_v18 = vrot.slane %v1397_v25, 1  ;;  %v1469_v58 = vsel %vm1020_vm4, %v3891_v33, %v1468_v0  ;;  %v989_v47 = vrot.slane %v3265_v45, 4  ;;  %v3904_v32 = vld [vmem:[#allocation68_spill] sm:$0xff] }
 0x1eb   : > { %v1334_v40 = vadd.f32 %v3890_v28, %v3889_v14  ;;  %1434 = vrot.lane.b32.xlu1 %v3466_v8, %s2632_s23  ;;  %v1470_v31 = vsel %vm1022_vm5, %v3892_v7, %v1469_v58  ;;  %v1329_v22 = vadd.f32 %v1328_v27, %v3888_v16  ;;  %v1341_v49 = vadd.f32 %v1340_v42, %v3261_v43  ;;  %v3898_v43 = vld [vmem:[#allocation81_spill] sm:$0xff]  ;;  %v3900_v42 = vld [vmem:[#allocation62_spill] sm:$0xff] }
 0x1ec   : > { %v1399_v46 = vadd.f32 %v1398_v18, %v1397_v25  ;;  %v1471_v13 = vsel %vm1024_vm6, %v1385_v1, %v1470_v31  ;;  %v1460_v60 = vsel %vm1016_vm2, %v3894_v29, %v3893_v9  ;;  %v2146_v30 = vrot.slane %v3896_v61, 1  ;;  %v3901_v25 = vld [vmem:[#allocation7_spill] sm:$0xff]  ;;  %v3905_v14 = vld [vmem:[#allocation45_spill] sm:$0xff]  ;;  %v3908_v58 = vld [vmem:[#allocation58_spill] sm:$0xff] }
 0x1ed   : > { %v1335_v15 = vrot.slane %v1334_v40, 1  ;;  %v1472_v48 = vsel %vm1026_vm7, %v1392_v6, %v1471_v13  ;;  %v1461_v56 = vsel %vm1018_vm3, %v3895_v57, %v1460_v60  ;;  %v1342_v2 = vrot.slane %v1341_v49, 1  ;;  %v3909_v13 = vld [vmem:[#allocation5_spill] sm:$0xff]  ;;  %v3911_v60 = vld [vmem:[#allocation30_spill] sm:$0xff] }
 0x1ee   : > { %v3486_v34 = vsel %vm1028_vm8, %v1399_v46, %v1472_v48  ;;  %v1462_v53 = vsel %vm1020_vm4, %v3897_v38, %v1461_v56  ;;  %v3899_v55 = vrot.slane %v3898_v43, 2  ;;  %v832_v39 = vadd.f32 %v831_v35, %v3240_v17  ;;  %v3912_v56 = vld [vmem:[#allocation43_spill] sm:$0xff] }
 0x1ef   : > { %v1336_v11 = vadd.f32 %v1335_v15, %v1334_v40  ;;  %1482 = vrot.lane.b32.xlu0 %v3486_v34, %s2632_s23  ;;  %v1463_v59 = vsel %vm1022_vm5, %v3900_v42, %v1462_v53  ;;  %v2147_v5 = vadd.f32 %v2146_v30, %v3896_v61  ;;  %v2158_v10 = vrot.slane %v3254_v62, 2  ;;  %v3906_v40 = vld [vmem:[#allocation79_spill] sm:$0xff]  ;;  %v3913_v30 = vld [vmem:[#allocation88_spill] sm:$0xff] }
 0x1f0   : > { %v2152_v36 = vadd.f32 %v3899_v55, %v3898_v43  ;;  %v1343_v1 = vadd.f32 %v1342_v2, %v1341_v49  ;;  %v1464_v44 = vsel %vm1024_vm6, %v1329_v22, %v1463_v59  ;;  %v2229_v23 = vsel %vm1016_vm2, %v3902_v54, %v3901_v25  ;;  %v3910_v49 = vld [vmem:[#allocation17_spill] sm:$0xff]  ;;  %v3914_v43 = vld [vmem:[#allocation56_spill] sm:$0xff] }
 0x1f1   : > { %v1465_v17 = vsel %vm1026_vm7, %v1336_v11, %v1464_v44  ;;  %v2159_v35 = vadd.f32 %v2158_v10, %v3254_v62  ;;  %v2230_v12 = vsel %vm1018_vm3, %v3903_v4, %v2229_v23  ;;  %v2090_v0 = vrot.slane %v3904_v32, 1  ;;  %v3918_v10 = vld [vmem:[#allocation22_spill] sm:$0xff]  ;;  %v3919_v54 = vld [vmem:[#allocation36_spill] sm:$0xff] }
 0x1f2   : > { %v2153_v21 = vrot.slane %v2152_v36, 1  ;;  %v3512_v16 = vsel %vm1028_vm8, %v1343_v1, %v1465_v17  ;;  %v2231_v28 = vsel %vm1020_vm4, %v3905_v14, %v2230_v12  ;;  %v3907_v6 = vrot.slane %v3906_v40, 2  ;;  %v3921_v12 = vld [vmem:[#allocation85_spill] sm:$0xff] }
 0x1f3   : > { %v990_v33 = vadd.f32 %v989_v47, %v3265_v45  ;;  %1480 = vrot.lane.b32.xlu1 %v3512_v16, %s2632_s23  ;;  %v2160_v62 = vrot.slane %v2159_v35, 1  ;;  %v2232_v7 = vsel %vm1022_vm5, %v3908_v58, %v2231_v28  ;;  %v2091_v31 = vadd.f32 %v2090_v0, %v3904_v32  ;;  %v3923_v28 = vld [vmem:[#allocation8_spill] sm:$0xff] }
 0x1f4   : > { %v2154_v27 = vadd.f32 %v2153_v21, %v2152_v36  ;;  %v2096_v18 = vadd.f32 %v3907_v6, %v3906_v40  ;;  %v2233_v22 = vsel %vm1024_vm6, %v2147_v5, %v2232_v7  ;;  %v2102_v46 = vrot.slane %v3247_v51, 2  ;;  %v3917_v5 = vld [vmem:[#allocation9_spill] sm:$0xff]  ;;  %v3924_v40 = vld [vmem:[#allocation20_spill] sm:$0xff] }
 0x1f5   : > { %v2222_v9 = vsel %vm1016_vm2, %v3910_v49, %v3909_v13  ;;  %v776_v45 = vadd.f32 %v775_v24, %v3238_v41  ;;  %v2161_v47 = vadd.f32 %v2160_v62, %v2159_v35  ;;  %v826_v2 = vrot.slane %v3913_v30, 1  ;;  %v3920_v35 = vld [vmem:[#allocation50_spill] sm:$0xff] }
 0x1f6   : > { %v2097_v15 = vrot.slane %v2096_v18, 1  ;;  %v2234_v29 = vsel %vm1026_vm7, %v2154_v27, %v2233_v22  ;;  %v2223_v48 = vsel %vm1018_vm3, %v3911_v60, %v2222_v9  ;;  %v2103_v57 = vadd.f32 %v2102_v46, %v3247_v51  ;;  %v3915_v51 = vld [vmem:[#allocation72_spill] sm:$0xff]  ;;  %v3922_v27 = vld [vmem:[#allocation63_spill] sm:$0xff]  ;;  %v3928_v46 = vld [vmem:[#allocation69_spill] sm:$0xff] }
 0x1f7   : > { %v2224_v61 = vsel %vm1020_vm4, %v3912_v56, %v2223_v48  ;;  %v991_v38 = vrot.slane %v990_v33, 2  ;;  %v3541_v53 = vsel %vm1028_vm8, %v2161_v47, %v2234_v29  ;;  %v833_v24 = vrot.slane %v832_v39, 1  ;;  %v3930_v60 = vld [vmem:[#allocation33_spill] sm:$0xff] }
 0x1f8   : > { %v2098_v11 = vadd.f32 %v2097_v15, %v2096_v18  ;;  %v2225_v41 = vsel %vm1022_vm5, %v3914_v43, %v2224_v61  ;;  %2244 = vrot.lane.b32.xlu0 %v3541_v53, %s2632_s23  ;;  %v2104_v55 = vrot.slane %v2103_v57, 1  ;;  %v3916_v42 = vrot.slane %v3915_v51, 1  ;;  %v3925_v18 = vld [vmem:[#allocation76_spill] sm:$0xff] }
 0x1f9   : > { %v2226_v36 = vsel %vm1024_vm6, %v2091_v31, %v2225_v41  ;;  %v1030_v1 = vsel %vm1016_vm2, %v3918_v10, %v3917_v5  ;;  %v827_v21 = vadd.f32 %v826_v2, %v3913_v30  ;;  %v834_v25 = vadd.f32 %v833_v24, %v832_v39  ;;  %v3926_v39 = vld [vmem:[#allocation86_spill] sm:$0xff]  ;;  %v3932_v2 = vld [vmem:[#allocation59_spill] sm:$0xff]  ;;  %v3934_v24 = vld [vmem:[#allocation25_spill] sm:$0xff] }
 0x1fa   : > { %v820_v59 = vadd.f32 %v3916_v42, %v3915_v51  ;;  %v2227_v44 = vsel %vm1026_vm7, %v2098_v11, %v2226_v36  ;;  %v1031_v23 = vsel %vm1018_vm3, %v3919_v54, %v1030_v1  ;;  %v2105_v17 = vadd.f32 %v2104_v55, %v2103_v57  ;;  %v3931_v57 = vld [vmem:[#allocation46_spill] sm:$0xff]  ;;  %v3935_v36 = vld [vmem:[#allocation71_spill] sm:$0xff] }
 0x1fb   : > { %v1032_v4 = vsel %vm1020_vm4, %v3920_v35, %v1031_v23  ;;  %v770_v32 = vrot.slane %v3921_v12, 1  ;;  %v777_v0 = vrot.slane %v776_v45, 1  ;;  %v1017_v6 = vsel %vm1016_vm2, %v3924_v40, %v3923_v28  ;;  %v3936_v10 = vld [vmem:[#allocation38_spill] sm:$0xff] }
 0x1fc   : > { %v1033_v14 = vsel %vm1022_vm5, %v3922_v27, %v1032_v4  ;;  %v979_v62 = vrot.slane %v3925_v18, 1  ;;  %v3927_v58 = vrot.slane %v3926_v39, 2  ;;  %v935_v31 = vrot.slane %v3257_v20, 2  ;;  %v3940_v23 = vld [vmem:[#allocation82_spill] sm:$0xff] }
 0x1fd   : > { %v3572_v22 = vsel %vm1028_vm8, %v2105_v17, %v2227_v44  ;;  %v1034_v15 = vsel %vm1024_vm6, %v820_v59, %v1033_v14  ;;  %v3929_v13 = vrot.slane %v3928_v46, 1  ;;  %v771_v47 = vadd.f32 %v770_v32, %v3921_v12  ;;  %v3942_v32 = vld [vmem:[#allocation64_spill] sm:$0xff] }
 0x1fe   : > { %v985_v7 = vadd.f32 %v3927_v58, %v3926_v39  ;;  %2242 = vrot.lane.b32.xlu1 %v3572_v22, %s2632_s23  ;;  %v1035_v9 = vsel %vm1026_vm7, %v827_v21, %v1034_v15  ;;  %v778_v29 = vadd.f32 %v777_v0, %v776_v45  ;;  %v1019_v48 = vsel %vm1018_vm3, %v3930_v60, %v1017_v6  ;;  %v3933_v45 = vld [vmem:[#allocation13_spill] sm:$0xff]  ;;  %v3943_v6 = vld [vmem:[#allocation10_spill] sm:$0xff] }
 0x1ff   : > { %v764_v49 = vadd.f32 %v3929_v13, %v3928_v46  ;;  %v3585_v11 = vsel %vm1028_vm8, %v834_v25, %v1035_v9  ;;  %v1021_v56 = vsel %vm1020_vm4, %v3931_v57, %v1019_v48  ;;  %v992_v30 = vadd.f32 %v991_v38, %v990_v33  ;;  %v3937_v38 = vld [vmem:[#allocation60_spill] sm:$0xff]  ;;  %v3939_v25 = vld [vmem:[#allocation51_spill] sm:$0xff]  ;;  %v3641_v48 = vpop.permute.xlu0 %997  ;;  %v3643_v57 = vpop.permute.xlu1 %1056 }
 0x200   : > { %v986_v61 = vrot.slane %v985_v7, 1  ;;  %1047 = vrot.lane.b32.xlu0 %v3585_v11, %s2632_s23  ;;  %v1023_v43 = vsel %vm1022_vm5, %v3932_v2, %v1021_v56  ;;  %v980_v41 = vadd.f32 %v979_v62, %v3925_v18  ;;  %v1082_v55 = vsel %vm1016_vm2, %v3934_v24, %v3933_v45  ;;  %v3944_v18 = vld [vmem:[#allocation21_spill] sm:$0xff]  ;;  %v3946_v46 = vld [vmem:[#allocation47_spill] sm:$0xff] }
 0x201   : > { %v923_v51 = vrot.slane %v3935_v36, 1  ;;  %v1025_v42 = vsel %vm1024_vm6, %v764_v49, %v1023_v43  ;;  %v993_v5 = vrot.slane %v992_v30, 1  ;;  %v1083_v33 = vsel %vm1018_vm3, %v3936_v10, %v1082_v55 }
 0x202   : > { %v987_v59 = vadd.f32 %v986_v61, %v985_v7  ;;  %v3938_v1 = vrot.slane %v3937_v38, 1  ;;  %v1027_v21 = vsel %vm1026_vm7, %v771_v47, %v1025_v42  ;;  %v1084_v54 = vsel %vm1020_vm4, %v3939_v25, %v1083_v33  ;;  %v3945_v7 = vld [vmem:[#allocation34_spill] sm:$0xff] }
 0x203   : > { %v3941_v17 = vrot.slane %v3940_v23, 2  ;;  %v3611_v4 = vsel %vm1028_vm8, %v778_v29, %v1027_v21  ;;  %v994_v12 = vadd.f32 %v993_v5, %v992_v30  ;;  %v1085_v0 = vsel %vm1022_vm5, %v3942_v32, %v1084_v54 }
 0x204   : > { %v917_v44 = vadd.f32 %v3938_v1, %v3937_v38  ;;  %v936_v27 = vadd.f32 %v935_v31, %v3257_v20  ;;  %1045 = vrot.lane.b32.xlu1 %v3611_v4, %s2632_s23  ;;  %v1086_v14 = vsel %vm1024_vm6, %v980_v41, %v1085_v0  ;;  %v924_v28 = vadd.f32 %v923_v51, %v3935_v36 }
 0x205   : > { %v929_v35 = vadd.f32 %v3941_v17, %v3940_v23  ;;  %v1075_v62 = vsel %vm1016_vm2, %v3944_v18, %v3943_v6  ;;  %v1087_v39 = vsel %vm1026_vm7, %v987_v59, %v1086_v14  ;;  %v1806_v2 = vmul.f32 %v3311_v63, %v3641_v48 }
 0x206   : > { %v937_v58 = vrot.slane %v936_v27, 1  ;;  %v1076_v15 = vsel %vm1018_vm3, %v3945_v7, %v1075_v62  ;;  %v3627_v20 = vsel %vm1028_vm8, %v994_v12, %v1087_v39  ;;  %v1805_v45 = vmul.f32 %v3321_v37, %v3641_v48 }
 0x207   : > { %v930_v40 = vrot.slane %v929_v35, 1  ;;  %v1077_v13 = vsel %vm1020_vm4, %v3946_v46, %v1076_v15  ;;  %1101 = vrot.lane.b32.xlu0 %v3627_v20, %s2632_s23  ;;  %v1850_v55 = vmul.f32 %v3397_v3, %v3643_v57  ;;  %v1849_v51 = vmul.f32 %v3422_v26, %v3643_v57 }
 0x208   : > { %v938_v49 = vadd.f32 %v937_v58, %v936_v27  ;;  %v1078_v9 = vsel %vm1022_vm5, %v917_v44, %v1077_v13  ;;  %v2195_v63 = vmul.f32 %v3353_v50, %v3641_v48  ;;  %v2239_v37 = vmul.f32 %v3541_v53, %v3643_v57 }
 0x209   : > { %v931_v31 = vadd.f32 %v930_v40, %v929_v35  ;;  %v1079_v47 = vsel %vm1024_vm6, %v924_v28, %v1078_v9  ;;  %v2194_v3 = vmul.f32 %v3373_v19, %v3641_v48  ;;  %v2238_v21 = vmul.f32 %v3572_v22, %v3643_v57 }
 0x20a   : > { %v1433_v19 = vmul.f32 %v3441_v52, %v3641_v48  ;;  %v1477_v22 = vmul.f32 %v3486_v34, %v3643_v57  ;;  %v1432_v28 = vmul.f32 %v3466_v8, %v3641_v48  ;;  %v1476_v18 = vmul.f32 %v3512_v16, %v3643_v57 }
 0x20b   : > { %v1080_v29 = vsel %vm1026_vm7, %v931_v31, %v1079_v47  ;;  %v1040_v47 = vmul.f32 %v3585_v11, %v3641_v48 }
 0x20c   : > { %v3637_v60 = vsel %vm1028_vm8, %v938_v49, %v1080_v29 }
 0x20d   : > { %1099 = vrot.lane.b32.xlu1 %v3637_v60, %s2632_s23  ;;  %v1091_v11 = vmul.f32 %v3637_v60, %v3643_v57 }
 0x237   : > { %v3647_v61 = vpop.permute.xlu1 %1096 }
 0x238   : > { %v3645_v56 = vpop.permute.xlu0 %1042 }
 0x240   : > { %v1810_v30 = vpop.permute.xlu0 %1809 }
 0x241   : > { %v1814_v43 = vmul.f32 %v1810_v30, %v3645_v56 }
 0x242   : > { %v1808_v41 = vpop.permute.xlu1 %1807 }
 0x243   : > { %v1813_v24 = vmul.f32 %v1808_v41, %v3645_v56  ;;  %v1816_v36 = vadd.f32 %v1814_v43, %v1806_v2  ;;  %v1092_v2 = vmul.f32 %v3627_v20, %v3643_v57 }
 0x245   : > { %v1815_v42 = vadd.f32 %v1813_v24, %v1805_v45  ;;  %v1852_v59 = vadd.f32 %v1850_v55, %v1816_v36  ;;  %v1039_v45 = vmul.f32 %v3611_v4, %v3641_v48 }
 0x247   : > { %v1851_v5 = vadd.f32 %v1849_v51, %v1815_v42  ;;  %v2199_v10 = vpop.permute.xlu0 %2198 }
 0x248   : > { %v2203_v33 = vmul.f32 %v2199_v10, %v3645_v56 }
 0x24a   : > { %v2205_v38 = vadd.f32 %v2203_v33, %v2195_v63 }
 0x24c   : > { %v2197_v1 = vpop.permute.xlu1 %2196  ;;  %v2241_v26 = vadd.f32 %v2239_v37, %v2205_v38 }
 0x24d   : > { %v2202_v44 = vmul.f32 %v2197_v1, %v3645_v56 }
 0x24f   : > { %v2204_v25 = vadd.f32 %v2202_v44, %v2194_v3 }
 0x250   : > { %v1856_v54 = vpop.permute.xlu0 %1855 }
 0x251   : > { %v1860_v50 = vmul.f32 %v1856_v54, %v3647_v61  ;;  %v2240_v23 = vadd.f32 %v2238_v21, %v2204_v25 }
 0x253   : > { %v1862_v17 = vadd.f32 %v1860_v50, %v1852_v59 }
 0x255   : > { %v1854_v35 = vpop.permute.xlu1 %1853  ;;  %1867 = vrot.lane.b32.xlu0 %v1862_v17, %s2633_s24 }
 0x256   : > { %v1859_v53 = vmul.f32 %v1854_v35, %v3647_v61 }
 0x258   : > { %v1861_v12 = vadd.f32 %v1859_v53, %v1851_v5 }
 0x259   : > { %v1437_v32 = vpop.permute.xlu0 %1436 }
 0x25a   : > { %v1441_v0 = vmul.f32 %v1437_v32, %v3645_v56  ;;  %1865 = vrot.lane.b32.xlu1 %v1861_v12, %s2633_s24 }
 0x25c   : > { %v1443_v27 = vadd.f32 %v1441_v0, %v1433_v19 }
 0x25d   : > { %v1435_v14 = vpop.permute.xlu1 %1434 }
 0x25e   : > { %v1440_v40 = vmul.f32 %v1435_v14, %v3645_v56  ;;  %v1479_v6 = vadd.f32 %v1477_v22, %v1443_v27 }
 0x260   : > { %v1442_v62 = vadd.f32 %v1440_v40, %v1432_v28 }
 0x261   : > { %v1483_v39 = vpop.permute.xlu0 %1482 }
 0x262   : > { %v1487_v52 = vmul.f32 %v1483_v39, %v3647_v61  ;;  %v1478_v58 = vadd.f32 %v1476_v18, %v1442_v62 }
 0x264   : > { %v1489_v7 = vadd.f32 %v1487_v52, %v1479_v6 }
 0x265   : > { %v1481_v15 = vpop.permute.xlu1 %1480 }
 0x266   : > { %v1486_v34 = vmul.f32 %v1481_v15, %v3647_v61  ;;  %1494 = vrot.lane.b32.xlu0 %v1489_v7, %s2634_s25 }
 0x268   : > { %v1488_v31 = vadd.f32 %v1486_v34, %v1478_v58 }
 0x26a   : > { %v2245_v46 = vpop.permute.xlu0 %2244  ;;  %1492 = vrot.lane.b32.xlu1 %v1488_v31, %s2634_s25 }
 0x26b   : > { %v2249_v8 = vmul.f32 %v2245_v46, %v3647_v61 }
 0x26d   : > { %v2251_v13 = vadd.f32 %v2249_v8, %v2241_v26 }
 0x26f   : > { %2256 = vrot.lane.b32.xlu0 %v2251_v13, %s2635_s26 }
 0x270   : > { %v2243_v49 = vpop.permute.xlu1 %2242 }
 0x271   : > { %v2248_v16 = vmul.f32 %v2243_v49, %v3647_v61 }
 0x272   : > { %v1048_v9 = vpop.permute.xlu0 %1047 }
 0x273   : > { %v2250_v29 = vadd.f32 %v2248_v16, %v2240_v23  ;;  %v1052_v30 = vmul.f32 %v1048_v9, %v3645_v56 }
 0x275   : > { %v1054_v43 = vadd.f32 %v1052_v30, %v1040_v47  ;;  %2254 = vrot.lane.b32.xlu1 %v2250_v29, %s2635_s26 }
 0x276   : > { %v1046_v41 = vpop.permute.xlu1 %1045 }
 0x277   : > { %v1051_v24 = vmul.f32 %v1046_v41, %v3645_v56  ;;  %v1094_v55 = vadd.f32 %v1092_v2, %v1054_v43 }
 0x279   : > { %v1053_v36 = vadd.f32 %v1051_v24, %v1039_v45  ;;  %v1102_v51 = vpop.permute.xlu0 %1101 }
 0x27a   : > { %v1106_v42 = vmul.f32 %v1102_v51, %v3647_v61 }
 0x27b   : > { %v1093_v20 = vadd.f32 %v1091_v11, %v1053_v36 }
 0x27c   : > { %v1108_v59 = vadd.f32 %v1106_v42, %v1094_v55 }
 0x27e   : > { %1111 = vst.msk [vmem:[%s357_s28 + $0x8] sm:$0xff] %vm1109_vm9, %v1108_v59 }
 0x27f   : > { %v1100_v5 = vpop.permute.xlu1 %1099 }
 0x280   : > { %v1105_v4 = vmul.f32 %v1100_v5, %v3647_v61 }
 0x282   : > { %v1107_v48 = vadd.f32 %v1105_v4, %v1093_v20 }
 0x284   : > { %1110 = vst.msk [vmem:[%s357_s28] sm:$0xff] %vm1109_vm9, %v1107_v48 }
 0x2c7   : > { %v1868_v56 = vpop.permute.xlu0 %1867 }
 0x2cc   : > { %v1866_v10 = vpop.permute.xlu1 %1865 }
 0x2d8   : > { %v1495_v63 = vpop.permute.xlu0 %1494 }
 0x2d9   : > { %1500 = vst.msk [vmem:[%s357_s28 + $0x8] sm:$0xff] %vm1498_vm10, %v1495_v63 }
 0x2da   : > { %1873 = vst.msk [vmem:[%s357_s28 + $0x8] sm:$0xff] %vm1871_vm11, %v1868_v56 }
 0x2dc   : > { %v1493_v60 = vpop.permute.xlu1 %1492 }
 0x2dd   : > { %1499 = vst.msk [vmem:[%s357_s28] sm:$0xff] %vm1498_vm10, %v1493_v60 }
 0x2de   : > { %1872 = vst.msk [vmem:[%s357_s28] sm:$0xff] %vm1871_vm11, %v1866_v10 }
 0x2e1   : > { %v2257_v57 = vpop.permute.xlu0 %2256 }
 0x2e2   : > { %2262 = vst.msk [vmem:[%s357_s28 + $0x8] sm:$0xff] %vm2260_vm12, %v2257_v57 }
 0x2e4   : > { %2269 = sbr.rel (!%p2691_p6) target bundleno = 753 (0x2f1), region = 74 }
 0x2e7   : > { %v2255_v33 = vpop.permute.xlu1 %2254 }
 0x2e8   : > { %2261 = vst.msk [vmem:[%s357_s28] sm:$0xff] %vm2260_vm12, %v2255_v33 }
 0x2e9   : > { %v2307_v37 = vld [vmem:[%s357_s28 + $0x8] sm:$0xff] }
 0x2ea   : > { %2308 = vst [vmem:[%s2274_s4 + $0x20] sm:$0xff] %v2307_v37 }
 0x2ef   : > { %v2305_v61 = vld [vmem:[%s357_s28] sm:$0xff] }
 0x2f0   : > { %2306 = vst [vmem:[%s2274_s4] sm:$0xff] %v2305_v61 }
 0x2f1 PF: > { %s13_s16 = sadd.s32 1, %s2626_s16   ;;  %s3947_s12 = smov %s2614_s13 }
 0x2f2   : > { %p10_p12 = scmp.ge.s32.totalorder %s13_s16, 6   ;;  %s3948_s13 = smov %s2696_s22 }
 0x2f3   : > { %s3949_s14 = smov %s2622_s15  ;;  %s3950_s15 = smov %s3952_s17 }
 0x2f4   :  { %12 = sbr.rel (!%p10_p12) target bundleno = 3 (0x3), region = 146 }

</bundles_post_ra>
